<compile_context>
chip_gen: v7x
topology: tpu7x:2x2x1
jax: 0.10.0
libtpu: 0.0.40
codegen_flags: <defaults>
</compile_context>

<pallas_src>
import functools

import jax
import jax.numpy as jnp
from jax import lax
from jax.experimental import pallas as pl
from jax.experimental.pallas import tpu as pltpu

VMEM_LIMIT = 48 * 1024 * 1024


def _tile_size(m, cap):
    t = max(min(m, cap), 1)
    while m % t:
        t -= 1
    return t


def _round_up(v, m):
    return (v + m - 1) // m * m


# ----------------------------------------------------------------------------
# Direct convolution kernels ('same' padding, stride 1).
#   * 3x3 (optional dilation): bf16 padded scratch holds the 3 W-shifted copies
#     stacked along channels -> 3 matmuls with K = 3*Cin, taps are outer-dim
#     row slices only.  Grid = (N, H_tiles), input resident across tiles.
#   * 1x1: fully tiled input, one matmul.
# Optional: multiple inputs (fused channel concat) and fused SE channel scale.
# ----------------------------------------------------------------------------
def _conv3x3_kernel(*refs, n_in, dilation, relu, has_scale, th):
    x_refs = refs[:n_in]
    idx = n_in
    if has_scale:
        s_ref = refs[idx]
        idx += 1
    w_ref, b_ref, o_ref, xpad_ref = refs[idx], refs[idx + 1], refs[idx + 2], refs[idx + 3]

    d = dilation
    H, W = x_refs[0].shape[1], x_refs[0].shape[2]
    Wpr = xpad_ref.shape[1]
    ctot = w_ref.shape[1] // 3
    cout = o_ref.shape[3]
    t = pl.program_id(1)

    @pl.when(t == 0)
    def _fill():                       # once per image; core-safe (runs on owner core)
        if n_in == 1:
            blk = x_refs[0][0]
        else:
            blk = jnp.concatenate([xr[0] for xr in x_refs], axis=-1)
        if has_scale:
            blk = blk * s_ref[...]                      # fused SE rescale (N,1,C)
        blk = blk.astype(jnp.bfloat16)
        xpad_ref[...] = jnp.zeros_like(xpad_ref)        # zero halo every image
        # channel group kw holds x_padded shifted left by kw*d columns
        xpad_ref[d:d + H, d:d + W, 0:ctot] = blk
        xpad_ref[d:d + H, 0:W, ctot:2 * ctot] = blk
        if W > d:
            xpad_ref[d:d + H, 0:W - d, 2 * ctot:3 * ctot] = blk[:, d:, :]

    row0 = pl.multiple_of(t * th, th)
    acc = jnp.zeros((th * Wpr, cout), jnp.float32)
    for kh in range(3):                                  # 3 matmuls, K = 3*Cin
        tap = xpad_ref[pl.ds(row0 + kh * d, th)]         # (th, Wpr, 3*ctot) bf16
        acc = acc + jnp.dot(tap.reshape(th * Wpr, 3 * ctot), w_ref[kh],
                            preferred_element_type=jnp.float32)
    acc = acc + b_ref[...]
    if relu:
        acc = jnp.maximum(acc, 0.0)
    o_ref[0] = acc.reshape(th, Wpr, cout)[:, :W, :]


def _conv1x1_kernel(*refs, n_in, relu, has_scale):
    x_refs = refs[:n_in]
    idx = n_in
    if has_scale:
        s_ref = refs[idx]
        idx += 1
    w_ref, b_ref, o_ref = refs[idx], refs[idx + 1], refs[idx + 2]

    th, W = x_refs[0].shape[1], x_refs[0].shape[2]
    cout = o_ref.shape[3]
    if n_in == 1:
        blk = x_refs[0][0]
    else:
        blk = jnp.concatenate([xr[0] for xr in x_refs], axis=-1)
    if has_scale:
        blk = blk * s_ref[...]
    ctot = blk.shape[-1]
    x2d = blk.reshape(th * W, ctot).astype(jnp.bfloat16)
    acc = jnp.dot(x2d, w_ref[...], preferred_element_type=jnp.float32)
    acc = acc + b_ref[...]
    if relu:
        acc = jnp.maximum(acc, 0.0)
    o_ref[0] = acc.reshape(th, W, cout)


@functools.partial(jax.jit, static_argnames=("ksize", "dilation", "relu"))
def conv2d(xs, w, b, *, ksize, dilation=1, relu=True, in_scale=None):
    """xs: array or tuple of arrays (fused channel concat), NHWC f32.
    w: (Cin,Cout) bf16 for 1x1, (3, 3*Cin, Cout) bf16 for 3x3 (kw-major K).
    b: (1, Cout) f32.  in_scale: optional (N,1,Cin) SE gate fused in."""
    if not isinstance(xs, (tuple, list)):
        xs = (xs,)
    xs = tuple(xs)
    N, H, W, _ = xs[0].shape
    cins = tuple(int(x.shape[3]) for x in xs)
    ctot = sum(cins)
    cout = int(w.shape[-1])
    has_scale = in_scale is not None
    n_in = len(xs)
    TH = _tile_size(H, 32)
    nt = H // TH

    args = list(xs)
    if ksize == 1:
        in_specs = [pl.BlockSpec((1, TH, W, c), lambda n, t: (n, t, 0, 0)) for c in cins]
        if has_scale:
            in_specs.append(pl.BlockSpec((1, 1, ctot), lambda n, t: (n, 0, 0)))
            args.append(in_scale.reshape(N, 1, ctot))
        in_specs += [pl.BlockSpec((ctot, cout), lambda n, t: (0, 0)),
                     pl.BlockSpec((1, cout), lambda n, t: (0, 0))]
        kernel = functools.partial(_conv1x1_kernel, n_in=n_in, relu=relu,
                                   has_scale=has_scale)
        scratch = []
        dims = ("parallel", "parallel")
    else:
        d = dilation
        Hp = H + 2 * d
        Wpr = _round_up(W + 2 * d, 16)
        in_specs = [pl.BlockSpec((1, H, W, c), lambda n, t: (n, 0, 0, 0)) for c in cins]
        if has_scale:
            in_specs.append(pl.BlockSpec((1, 1, ctot), lambda n, t: (n, 0, 0)))
            args.append(in_scale.reshape(N, 1, ctot))
        in_specs += [pl.BlockSpec((3, 3 * ctot, cout), lambda n, t: (0, 0, 0)),
                     pl.BlockSpec((1, cout), lambda n, t: (0, 0))]
        kernel = functools.partial(_conv3x3_kernel, n_in=n_in, dilation=d,
                                   relu=relu, has_scale=has_scale, th=TH)
        scratch = [pltpu.VMEM((Hp, Wpr, 3 * ctot), jnp.bfloat16)]
        dims = ("parallel", "arbitrary")      # tile axis carries the scratch
    args += [w, b]

    return pl.pallas_call(
        kernel,
        out_shape=jax.ShapeDtypeStruct((N, H, W, cout), jnp.float32),
        grid=(N, nt),
        in_specs=in_specs,
        out_specs=pl.BlockSpec((1, TH, W, cout), lambda n, t: (n, t, 0, 0)),
        scratch_shapes=scratch,
        compiler_params=pltpu.CompilerParams(dimension_semantics=dims,
                                             vmem_limit_bytes=VMEM_LIMIT),
    )(*args)


# ----------------------------------------------------------------------------
# Fused GPD dilated branches: four grouped 3x3 convs (different dilations) +
# fused ReLU.  Per-branch bf16 scratch with the 3 W-shifted copies stacked
# along channels -> 3 matmuls per branch (K = 3*half), taps are free row slices.
# ----------------------------------------------------------------------------
def _gpd_kernel(y_ref, w_ref, b_ref, o_ref, xpad_ref, *, dilations, half):
    H, W = y_ref.shape[1], y_ref.shape[2]
    P = max(dilations)
    Wpr = xpad_ref.shape[2]
    y = y_ref[0]                                         # (H, W, 4*half)

    xpad_ref[...] = jnp.zeros_like(xpad_ref)             # per-image, core-safe
    for i, d in enumerate(dilations):
        br = y[:, :, i * half:(i + 1) * half].astype(jnp.bfloat16)
        xpad_ref[i, P:P + H, d:d + W, 0:half] = br
        xpad_ref[i, P:P + H, 0:W, half:2 * half] = br
        if W > d:
            xpad_ref[i, P:P + H, 0:W - d, 2 * half:3 * half] = br[:, d:, :]

    for i, d in enumerate(dilations):
        acc = jnp.zeros((H * Wpr, half), jnp.float32)
        for kh in range(3):
            tap = xpad_ref[i, P - d + kh * d:P - d + kh * d + H]   # (H,Wpr,3*half)
            acc = acc + jnp.dot(tap.reshape(H * Wpr, 3 * half), w_ref[i, kh],
                                preferred_element_type=jnp.float32)
        acc = jnp.maximum(acc + b_ref[i], 0.0)            # fused act1 ReLU
        o_ref[0, :, :, i * half:(i + 1) * half] = acc.reshape(H, Wpr, half)[:, :W, :]


@functools.partial(jax.jit, static_argnames=("dilations",))
def gpd_branches(y, w, b, *, dilations):
    N, H, W, C4 = y.shape
    half = C4 // 4
    P = max(dilations)
    Wpr = _round_up(W + 2 * P, 16)
    kernel = functools.partial(_gpd_kernel, dilations=dilations, half=half)
    return pl.pallas_call(
        kernel,
        out_shape=jax.ShapeDtypeStruct((N, H, W, C4), jnp.float32),
        grid=(N,),
        in_specs=[pl.BlockSpec((1, H, W, C4), lambda n: (n, 0, 0, 0)),
                  pl.BlockSpec((4, 3, 3 * half, half), lambda n: (0, 0, 0, 0)),
                  pl.BlockSpec((4, 1, half), lambda n: (0, 0, 0))],
        out_specs=pl.BlockSpec((1, H, W, C4), lambda n: (n, 0, 0, 0)),
        scratch_shapes=[pltpu.VMEM((4, H + 2 * P, Wpr, 3 * half), jnp.bfloat16)],
        compiler_params=pltpu.CompilerParams(dimension_semantics=("parallel",),
                                             vmem_limit_bytes=VMEM_LIMIT),
    )(y, w, b)


# ----------------------------------------------------------------------------
# SE block: Pallas does the tiled global channel-sum (P3 accumulator over H
# tiles); the two tiny FC matmuls + sigmoid run in XLA.  The channel rescale is
# fused into the conv that consumes the SE output (conv2d in_scale).
# ----------------------------------------------------------------------------
def _gap_kernel(x_ref, o_ref):
    t = pl.program_id(1)

    @pl.when(t == 0)
    def _init():
        o_ref[...] = jnp.zeros_like(o_ref)

    xs = x_ref[0]                                         # (TH, W, C)
    o_ref[...] += jnp.sum(jnp.sum(xs, axis=0, keepdims=True), axis=1, keepdims=True)


@jax.jit
def channel_sum(x):
    N, H, W, C = x.shape
    TH = _tile_size(H, 32)
    return pl.pallas_call(
        _gap_kernel,
        out_shape=jax.ShapeDtypeStruct((N, 1, C), jnp.float32),
        grid=(N, H // TH),
        in_specs=[pl.BlockSpec((1, TH, W, C), lambda n, t: (n, t, 0, 0))],
        out_specs=pl.BlockSpec((1, 1, C), lambda n, t: (n, 0, 0)),
        compiler_params=pltpu.CompilerParams(
            dimension_semantics=("parallel", "arbitrary")),
    )(x)


# ----------------------------------------------------------------------------
# 2x2 pooling (max, or avg == bilinear 0.5x align_corners=False) on a
# channel-folded view: all selections are static lane / outer-dim slices.
# ----------------------------------------------------------------------------
def _pool2x2_kernel(x_ref, o_ref, *, op):
    C = o_ref.shape[2]
    p00 = x_ref[:, 0, :, 0:C]
    p01 = x_ref[:, 0, :, C:2 * C]
    p10 = x_ref[:, 1, :, 0:C]
    p11 = x_ref[:, 1, :, C:2 * C]
    if op == "max":
        o_ref[...] = jnp.maximum(jnp.maximum(p00, p01), jnp.maximum(p10, p11))
    else:
        o_ref[...] = (p00 + p01 + p10 + p11) * 0.25


@functools.partial(jax.jit, static_argnames=("op",))
def pool2x2(x, *, op):
    N, H, W, C = x.shape
    assert H % 2 == 0 and W % 2 == 0
    H2, W2 = H // 2, W // 2
    xr = x.reshape(N * H2, 2, W2, 2 * C)
    M = N * H2
    TM = _tile_size(M, 64)
    out = pl.pallas_call(
        functools.partial(_pool2x2_kernel, op=op),
        out_shape=jax.ShapeDtypeStruct((M, W2, C), jnp.float32),
        grid=(M // TM,),
        in_specs=[pl.BlockSpec((TM, 2, W2, 2 * C), lambda i: (i, 0, 0, 0))],
        out_specs=pl.BlockSpec((TM, W2, C), lambda i: (i, 0, 0)),
        compiler_params=pltpu.CompilerParams(dimension_semantics=("parallel",)),
    )(xr)
    return out.reshape(N, H2, W2, C)


# ----------------------------------------------------------------------------
# Integer-factor bilinear upsample (align_corners=False), phase decomposed.
# Grid = (batch, H-phase).  H-phase coefficients are computed arithmetically
# from program_id (no select chain); W-phases are unrolled with static coefs.
# +-1 neighbours are derived in-kernel (no HBM shifted copies).  Optionally
# fuses the 1x1 cls conv and the head sigmoid; in that case the output is
# stored W-minor (lane dense) and depth-to-space'd outside the kernel.
# ----------------------------------------------------------------------------
def _phase_coefs(r):
    cs = []
    for j in range(r):
        g = (j + 0.5) / r - 0.5
        if g < 0.0:
            cs.append((float(-g), float(1.0 + g), 0.0))
        else:
            cs.append((0.0, float(1.0 - g), float(g)))
    return tuple(cs)


def _shift(v, axis, delta):
    """Edge-clamped +-1 shift of an in-kernel value along `axis`."""
    n = v.shape[axis]
    if n == 1:
        return v
    if delta < 0:     # out[i] = v[max(i-1, 0)]
        head = lax.slice_in_dim(v, 0, 1, axis=axis)
        body = lax.slice_in_dim(v, 0, n - 1, axis=axis)
        return jnp.concatenate([head, body], axis=axis)
    body = lax.slice_in_dim(v, 1, n, axis=axis)           # out[i] = v[min(i+1, n-1)]
    tail = lax.slice_in_dim(v, n - 1, n, axis=axis)
    return jnp.concatenate([body, tail], axis=axis)


def _upsample_kernel(*refs, r, wphase, cls_fuse, sigmoid):
    if cls_fuse:
        x_ref, wc_ref, bc_ref, o_ref = refs
    else:
        x_ref, o_ref = refs

    jh = pl.program_id(1)
    g = (jh.astype(jnp.float32) + 0.5) / float(r) - 0.5
    cm = jnp.maximum(-g, 0.0)
    cp = jnp.maximum(g, 0.0)
    c0 = 1.0 - cm - cp

    v = x_ref[0]                                           # (H, W, C)
    if cls_fuse:                                           # fused 1x1 cls conv
        v = jnp.sum(v * wc_ref[...], axis=-1) + bc_ref[...]   # (H, W), W in lanes

    vm = _shift(v, 0, -1)
    vp = _shift(v, 0, +1)
    y = cm * vm + c0 * v + cp * vp                         # row-interpolated
    ym = _shift(y, 1, -1)
    yp = _shift(y, 1, +1)

    if cls_fuse:
        for jw in range(r):
            am, a0, ap = wphase[jw]
            res = am * ym + a0 * y + ap * yp               # (H, W)
            if sigmoid:
                res = jax.nn.sigmoid(res)
            o_ref[0, :, 0, jw, :] = res                    # lane-dense (W minor)
    else:
        pieces = []
        for jw in range(r):
            am, a0, ap = wphase[jw]
            pieces.append(am * ym + a0 * y + ap * yp)
        o_ref[0, :, 0, :, :] = jnp.concatenate(pieces, axis=-1)   # (H, W, r*C)


@functools.partial(jax.jit, static_argnames=("r", "sigmoid"))
def upsample_bilinear(x, *, r, wcls=None, bcls=None, sigmoid=False):
    N, H, W, C = x.shape
    cls_fuse = wcls is not None
    kernel = functools.partial(_upsample_kernel, r=r, wphase=_phase_coefs(r),
                               cls_fuse=cls_fuse, sigmoid=sigmoid)
    in_specs = [pl.BlockSpec((1, H, W, C), lambda n, j: (n, 0, 0, 0))]
    args = [x]
    if cls_fuse:
        in_specs += [pl.BlockSpec((1, C), lambda n, j: (0, 0)),
                     pl.BlockSpec((1, 1), lambda n, j: (0, 0))]
        args += [wcls, bcls]
        out_shape = jax.ShapeDtypeStruct((N, H, r, r, W), jnp.float32)
        out_spec = pl.BlockSpec((1, H, 1, r, W), lambda n, j: (n, 0, j, 0, 0))
    else:
        out_shape = jax.ShapeDtypeStruct((N, H, r, W, r * C), jnp.float32)
        out_spec = pl.BlockSpec((1, H, 1, W, r * C), lambda n, j: (n, 0, j, 0, 0))

    out = pl.pallas_call(
        kernel,
        out_shape=out_shape,
        grid=(N, r),
        in_specs=in_specs,
        out_specs=out_spec,
        compiler_params=pltpu.CompilerParams(
            dimension_semantics=("parallel", "parallel"),
            vmem_limit_bytes=VMEM_LIMIT),
    )(*args)

    if cls_fuse:
        # (N, H, jh, jw, W) -> (N, H, jh, W, jw) -> (N, H*r, W*r, 1)
        return out.transpose(0, 1, 2, 4, 3).reshape(N, H * r, W * r, 1)
    return out.reshape(N, H * r, W * r, C)


def resize_bilinear(x, out_h, out_w):
    """F.interpolate(mode='bilinear', align_corners=False) for the ratios this
    model produces: identity, exact /2 (== 2x2 average pool), integer upscale."""
    N, H, W, C = x.shape
    if out_h == H and out_w == W:
        return x
    if out_h * 2 == H and out_w * 2 == W:
        return pool2x2(x, op="avg")
    assert out_h % H == 0 and out_w % W == 0 and out_h // H == out_w // W
    return upsample_bilinear(x, r=out_h // H)


# ----------------------------------------------------------------------------
# Deterministic parameter initialization
# ----------------------------------------------------------------------------
class ParamGen:
    def __init__(self, key):
        self.key = key

    def take(self, shape, scale=0.1):
        self.key, sub = jax.random.split(self.key)
        return jax.random.normal(sub, shape, jnp.float32) * scale


# ----------------------------------------------------------------------------
# Module builders (functional equivalents of the PyTorch modules)
# ----------------------------------------------------------------------------
def make_cbr(pg, cin, cout, ksize=3, dilation=1, use_relu=True):
    # ConvBNReLU: conv + (BN folded into bias) + optional ReLU, 'same' padding.
    if ksize == 1:
        w = pg.take((cin, cout)).astype(jnp.bfloat16)
    else:
        # (9, Cin, Cout) -> (3, 3*Cin, Cout): K index = kw*Cin + c (kw-major).
        w = pg.take((ksize * ksize, cin, cout)).reshape(
            ksize, ksize * cin, cout).astype(jnp.bfloat16)
    b = pg.take((1, cout), 0.01)

    def apply(xs, in_scale=None):
        return conv2d(xs, w, b, ksize=ksize, dilation=dilation, relu=use_relu,
                      in_scale=in_scale)
    return apply


def make_se(pg, cin, reduction=4):
    hid = max(cin // reduction, 1)
    w1 = pg.take((cin, hid))
    b1 = pg.take((1, hid), 0.01)
    w2 = pg.take((hid, cin))
    b2 = pg.take((1, cin), 0.01)

    def gate(xs):                      # (N,1,C) gate; rescale fused into next conv
        if not isinstance(xs, (tuple, list)):
            xs = (xs,)
        embs = []
        for x in xs:
            n, h, w_, c = x.shape
            embs.append(channel_sum(x)[:, 0, :] / float(h * w_))
        emb = jnp.concatenate(embs, axis=-1) if len(embs) > 1 else embs[0]
        h1 = jnp.maximum(emb @ w1 + b1, 0.0)               # tiny FCs in XLA
        return jax.nn.sigmoid(h1 @ w2 + b2)[:, None, :]
    return gate


def make_gpd(pg, cin, expansion=4, dilations=(1, 3, 6, 9)):
    mid = cin * expansion // 2
    half = cin // 2
    expand = make_cbr(pg, cin, mid, ksize=1)
    reduce_ = make_cbr(pg, mid, cin, ksize=1)
    end = make_cbr(pg, cin, cin, ksize=3)
    se = make_se(pg, mid, reduction=4)
    wbr = pg.take((4, 9, half, half)).reshape(4, 3, 3 * half, half).astype(jnp.bfloat16)
    bbr = pg.take((4, 1, half), 0.01)

    def apply(x):
        y = expand(x)                                       # (N,H,W,mid)
        r = gpd_branches(y, wbr, bbr, dilations=dilations)  # 4 dilated convs + ReLU
        g = se(r)                                           # (N,1,mid)
        r = reduce_(r, in_scale=g)                          # SE rescale fused
        return end(r)
    return apply


def make_fusenet(pg, c1, c2, out_ch):
    cats = [make_cbr(pg, c1[i] + c2[i], out_ch[i]) for i in range(5)]
    ses = [make_cbr(pg, out_ch[i], out_ch[i]) for i in range(5)]
    fus = [make_cbr(pg, out_ch[i], out_ch[i]) for i in range(5)]

    def apply(x1s, x2s):
        outs = []
        for i in range(5):
            a = resize_bilinear(x1s[i], x2s[i].shape[1], x2s[i].shape[2])
            m = cats[i]((a, x2s[i]))                        # concat fused into conv
            m = ses[i](m)
            m = fus[i](m)
            outs.append(m)
        return outs
    return apply


def make_fusemodule(pg, cin):
    se1 = make_se(pg, cin, reduction=cin)                   # SEBlock(cin, cin)
    conv1 = make_cbr(pg, cin, cin)
    se2 = make_se(pg, cin * 3 // 2, reduction=cin * 3 // 2)
    red = make_cbr(pg, cin * 3 // 2, cin, ksize=1)
    conv2 = make_cbr(pg, cin, cin)

    def apply(low, high):
        g1 = se1((low, high))                               # gate of virtual concat
        x = conv1((low, high), in_scale=g1)
        g2 = se2((x, high))
        x = red((x, high), in_scale=g2)
        return conv2(x)
    return apply


def make_decoder(pg, in_ch, out_ch):
    n = len(in_ch)
    inners_a = [make_cbr(pg, in_ch[i], out_ch[i] // 2, ksize=1) for i in range(n - 1)]
    inners_b = [make_cbr(pg, out_ch[i + 1], out_ch[i] // 2, ksize=1) for i in range(n - 1)]
    inners_a.append(make_cbr(pg, in_ch[-1], out_ch[-1], ksize=1))
    fuse = [make_fusemodule(pg, out_ch[i]) for i in range(n - 1)]
    fuse.append(make_cbr(pg, out_ch[-1], out_ch[-1]))

    def apply(features):
        stage = fuse[-1](inners_a[-1](features[-1]))
        results = [stage]
        for idx in range(len(features) - 2, -1, -1):
            td = resize_bilinear(inners_b[idx](stage),
                                 features[idx].shape[1], features[idx].shape[2])
            lat = inners_a[idx](features[idx])
            stage = fuse[idx](lat, td)
            results.insert(0, stage)
        return results
    return apply


def make_backbone_stub(pg, cin, out_chs, scales):
    # TODO(synk): stand-in for vgg16 / res2net101_v1b (external, not provided).
    projs = [make_cbr(pg, cin, oc, ksize=1) for oc in out_chs]

    def apply(x):
        feats = []
        for s, proj in zip(scales, projs):
            y = x
            for _ in range(s.bit_length() - 1):
                y = pool2x2(y, op="avg")                    # repeated 2x2 mean
            feats.append(proj(y))
        return feats
    return apply


def make_jcs(pg, enc, dec, vgg_ch, res_ch):
    vgg = make_backbone_stub(pg, 3, vgg_ch, scales=[1, 2, 4, 8, 16])
    res = make_backbone_stub(pg, 3, res_ch, scales=[2, 4, 8, 16, 32])
    fuse = make_fusenet(pg, vgg_ch, res_ch, enc[:-1])
    gpd = make_gpd(pg, enc[-1], expansion=4, dilations=(1, 3, 6, 9))
    gpd1 = make_gpd(pg, enc[-1], expansion=4, dilations=(1, 2, 3, 4))
    fpn = make_decoder(pg, enc, dec)
    cls_params = [(pg.take((1, dec[i])), pg.take((1, 1), 0.01)) for i in range(5)]

    def apply(x_nhwc):
        N, H, W, _ = x_nhwc.shape
        c1, c2, c3, c4, c5 = vgg(x_nhwc)
        r1, r2, r3, r4, r5 = res(x_nhwc)
        c5 = gpd(c5)
        c6 = pool2x2(c5, op="max")
        c6 = gpd1(c6)
        f1, f2, f3, f4, f5 = fuse([c1, c2, c3, c4, c5], [r1, r2, r3, r4, r5])
        feats = fpn([f1, f2, f3, f4, f5, c6])
        maps = []
        for i in range(5):
            wc, bc = cls_params[i]
            fi = feats[i]
            rr = H // fi.shape[1]
            # 1x1 cls conv + bilinear upsample to input size + sigmoid, fused
            maps.append(upsample_bilinear(fi, r=rr, wcls=wc, bcls=bc, sigmoid=True))
        return jnp.concatenate(maps, axis=-1)               # (N, H, W, 5)
    return apply


# ----------------------------------------------------------------------------
if __name__ == "__main__":
    root_key = jax.random.PRNGKey(0)
    input_key, param_key = jax.random.split(root_key)

    # Small channel config consistent with the module's structure
    # (original: enc=[64,128,256,512,512,512]; scaled to 8 for a synthetic run).
    ENC = [8, 8, 8, 8, 8, 8]
    DEC = [8, 8, 8, 8, 8, 8]
    VGG_CH = [8, 8, 8, 8, 8]
    RES_CH = [8, 8, 8, 8, 8]

    pg = ParamGen(param_key)
    model = make_jcs(pg, ENC, DEC, VGG_CH, RES_CH)

    # PyTorch-style NCHW input
    x_nchw = jax.random.normal(input_key, (2, 3, 64, 64), jnp.float32)
    x_nhwc = jnp.transpose(x_nchw, (0, 2, 3, 1))

    out_nhwc = model(x_nhwc)
    out_nchw = jnp.transpose(out_nhwc, (0, 3, 1, 2))        # back to (N, 5, H, W)
    out_nchw = jax.block_until_ready(out_nchw)

    assert out_nchw.shape == (2, 5, 64, 64), out_nchw.shape
    assert bool(jnp.all(jnp.isfinite(out_nchw)))
    assert bool(jnp.all((out_nchw >= 0.0) & (out_nchw <= 1.0)))
    print("KERNEL_OK")
</pallas_src>

<mosaic_0001>
module attributes {stable_mosaic.version = 11 : i64} {
  func.func @_conv1x1_kernel(%arg0: i32, %arg1: i32, %arg2: memref<1x32x64x3xf32, #tpu.memory_space<vmem>>, %arg3: memref<3x8xbf16, #tpu.memory_space<vmem>>, %arg4: memref<1x8xf32, #tpu.memory_space<vmem>>, %arg5: memref<1x32x64x8xf32, #tpu.memory_space<vmem>>) attributes {dimension_semantics = [#tpu.dimension_semantics<parallel>, #tpu.dimension_semantics<parallel>], iteration_bounds = array<i64: 2, 2>, scalar_prefetch = 0 : i64, scratch_operands = 0 : i64, tpu.core_type = #tpu.core_type<tc>, window_params = [{transform_indices = @transform_0, window_bounds = array<i64: 1, 32, 64, 3>}, {pipeline_mode = #tpu.pipeline_mode<synchronous>, transform_indices = @transform_1, window_bounds = array<i64: 3, 8>}, {pipeline_mode = #tpu.pipeline_mode<synchronous>, transform_indices = @transform_2, window_bounds = array<i64: 1, 8>}, {transform_indices = @transform_3, window_bounds = array<i64: 1, 32, 64, 8>}]} {
    %c0 = arith.constant 0 : index
    %c0_0 = arith.constant 0 : index
    %c0_1 = arith.constant 0 : index
    %c0_2 = arith.constant 0 : index
    %0 = vector.load %arg2[%c0, %c0_0, %c0_1, %c0_2] : memref<1x32x64x3xf32, #tpu.memory_space<vmem>>, vector<1x32x64x3xf32>
    %1 = vector.shape_cast %0 : vector<1x32x64x3xf32> to vector<32x64x3xf32>
    %2 = vector.shape_cast %1 : vector<32x64x3xf32> to vector<2048x3xf32>
    %3 = arith.truncf %2 : vector<2048x3xf32> to vector<2048x3xbf16>
    %c0_3 = arith.constant 0 : index
    %c0_4 = arith.constant 0 : index
    %4 = vector.load %arg3[%c0_3, %c0_4] : memref<3x8xbf16, #tpu.memory_space<vmem>>, vector<3x8xbf16>
    %cst = arith.constant dense<0.000000e+00> : vector<2048x8xf32>
    %5 = tpu.matmul %3, %4, %cst {dimension_numbers = #tpu.dot_dimension_numbers<[1], [0], [0], [1], [0, 0, 1, 1], [], []>} : vector<2048x3xbf16>, vector<3x8xbf16>, vector<2048x8xf32> -> vector<2048x8xf32>
    %c0_5 = arith.constant 0 : index
    %c0_6 = arith.constant 0 : index
    %6 = vector.load %arg4[%c0_5, %c0_6] : memref<1x8xf32, #tpu.memory_space<vmem>>, vector<1x8xf32>
    %7 = vector.broadcast %6 : vector<1x8xf32> to vector<2048x8xf32>
    %8 = arith.addf %5, %7 : vector<2048x8xf32>
    %cst_7 = arith.constant 0.000000e+00 : f32
    %9 = vector.broadcast %cst_7 : f32 to vector<2048x8xf32>
    %10 = arith.maximumf %8, %9 : vector<2048x8xf32>
    %11 = vector.shape_cast %10 : vector<2048x8xf32> to vector<32x64x8xf32>
    %c0_8 = arith.constant 0 : index
    %c0_9 = arith.constant 0 : index
    %c0_10 = arith.constant 0 : index
    %c0_11 = arith.constant 0 : index
    %12 = vector.load %arg5[%c0_8, %c0_9, %c0_10, %c0_11] : memref<1x32x64x8xf32, #tpu.memory_space<vmem>>, vector<1x32x64x8xf32>
    %13 = vector.shape_cast %12 : vector<1x32x64x8xf32> to vector<32x64x8xf32>
    %14 = vector.shape_cast %11 : vector<32x64x8xf32> to vector<1x32x64x8xf32>
    tpu.vector_store %arg5[%c0_8, %c0_9, %c0_10, %c0_11], %14 {strides = array<i32>} : memref<1x32x64x8xf32, #tpu.memory_space<vmem>>, vector<1x32x64x8xf32>,
    return
  }
  func.func @transform_0(%arg0: i32, %arg1: i32) -> (i32, i32, i32, i32) {
    %c0_i32 = arith.constant 0 : i32
    %c0_i32_0 = arith.constant 0 : i32
    %c0_i32_1 = arith.constant 0 : i32
    return %arg0, %arg1, %c0_i32, %c0_i32_0 : i32, i32, i32, i32
  }
  func.func @transform_1(%arg0: i32, %arg1: i32) -> (i32, i32) {
    %c0_i32 = arith.constant 0 : i32
    %c0_i32_0 = arith.constant 0 : i32
    %c0_i32_1 = arith.constant 0 : i32
    return %c0_i32, %c0_i32_0 : i32, i32
  }
  func.func @transform_2(%arg0: i32, %arg1: i32) -> (i32, i32) {
    %c0_i32 = arith.constant 0 : i32
    %c0_i32_0 = arith.constant 0 : i32
    %c0_i32_1 = arith.constant 0 : i32
    return %c0_i32, %c0_i32_0 : i32, i32
  }
  func.func @transform_3(%arg0: i32, %arg1: i32) -> (i32, i32, i32, i32) {
    %c0_i32 = arith.constant 0 : i32
    %c0_i32_0 = arith.constant 0 : i32
    %c0_i32_1 = arith.constant 0 : i32
    return %arg0, %arg1, %c0_i32, %c0_i32_0 : i32, i32, i32, i32
  }
}

</mosaic_0001>

<bundles_post_ra>
// kernel: conv2d.1
= control target key start
LH: loop header
LB: loop body
LE: loop exit
PB: predicated region body
PF: predicated region fallthrough
CT: control target
= control target key end

     0   :  { %s3306_s12 = smov 0   ;;  %s3308_s13 = smov 0   ;;  %s4538_s0 = inlined_call_operand.vmem [shape: f32[2,64,64,3], index: 0, kind: input, shape index: {}]   ;;  %s4539_s1 = inlined_call_operand.vmem [shape: bf16[3,8], index: 1, kind: input, shape index: {}]   ;;  %s4540_s2 = inlined_call_operand.vmem [shape: f32[1,8], index: 2, kind: input, shape index: {}]   ;;  %s4541_s3 = inlined_call_operand.vmem [shape: f32[2,64,64,8], index: 3, kind: output, shape index: {}]  }
   0x1   :  { %s3310_s14 = smov 0   ;;  %s3312_s15 = smov 0  }
   0x2   :  { %s3314_s16 = smov 0  }
   0x3 LB: > { %s22_s17 = sadd.s32 1, %s3275_s14  ;;  %s25_s18 = sadd.s32 1, %s3279_s15  ;;  %s3283_s16 = sphi %s3314_s16, %s13_s16   ;;  %s3279_s15 = sphi %s3312_s15, %s4545_s15   ;;  %s3275_s14 = sphi %s3310_s14, %s4544_s14   ;;  %s3271_s13 = sphi %s3308_s13, %s4543_s13   ;;  %s3267_s12 = sphi %s3306_s12, %s4542_s12  }
   0x4   : > { %p23_p0 = scmp.ge.s32.totalorder %s22_s17, 2  ;;  %p2673_p1 = scmp.ge.s32.totalorder %s3283_s16, 1 }
   0x5   : > { %p159_p2 = scmp.lt.s32.totalorder %s3283_s16, 5 }
   0x6   : > { %s4547_s17 = smov (%p23_p0, %s22_s17), 0  ;;  %s4549_s18 = smov (!%p23_p0, %s25_s18), %s3279_s15 }
   0x7   : > { %p160_p3 = pnand %p2673_p1, %p159_p2  ;;  %p27_p4 = scmp.ge.s32.totalorder %s4549_s18, 2 }
   0x8   : > { %v600_v0 = vld [vmem:[%s4539_s1] sm:$0x3] (!%p160_p3)  ;;  %vm993_vm0 = vcmask (!%p160_p3), 1040384   ;;  %vm994_vm1 = vcmask (!%p160_p3), 1041408   ;;  %s2674_s21 = sshll.u32 (!%p160_p3), %s3267_s12, 5  ;;  %v3285_v1 = vmov (!%p160_p3), 65535  }
   0x9   : > { %s4551_s18 = smov (%p27_p4, %s4549_s18), 0  ;;  %163 = sbr.rel (%p160_p3) target bundleno = 494 (0x1ee), region = 32 }
   0xa   : > { %v995_v2 = vsel (!%p160_p3), %vm993_vm0, 4294967295, %v3285_v1  ;;  %p194_p5 = scmp.lt.s32.totalorder (!%p160_p3), %s3271_s13, 1  ;;  %p196_p6 = scmp.lt.s32.totalorder (!%p160_p3), %s2674_s21, 63  ;;  %vm608_vm2 = vcmask (!%p160_p3), 23552   ;;  %vm2313_vm3 = vcmask (!%p160_p3), 64512  }
   0xb   : > { %v996_v3 = vsel (!%p160_p3), %vm994_vm1, %v995_v2, 0 }
   0xc   : > { %v998_v4 = vand.u32 (!%p160_p3), %v996_v3, %v600_v0 }
   0xe   : > { %2942 = vmatprep.subr.bf16.mxu0 (!%p160_p3), %v998_v4  ;;  %3200 = vmatprep.subr.bf16.mxu1 (!%p160_p3), %v998_v4 }
   0xf   : > { %2943 = vmatpush3.bf16.msra.mxu0 (!%p160_p3), %v998_v4  ;;  %3201 = vmatpush3.bf16.msra.mxu1 (!%p160_p3), %v998_v4 }
  0x10   : > { %s4553_s13 = smov (!%p194_p5, %s3271_s13), 1  ;;  %s4555_s21 = smov (!%p196_p6, %s2674_s21), 63 }
  0x11   : > { %s2676_s22 = sshll.u32 %s4553_s13, 9  ;;  %s2675_s23 = sshll.u32 %s4555_s21, 3 }
  0x12   : > { %s3339_s24 = sadd.s32 %s2676_s22, %s2675_s23 }
  0x13   : > { %s2677_s25 = sshll.u32 %s3339_s24, 3 }
  0x14   : > { %s3347_s28 = scalar_lea.vmem %s4538_s0, %s2677_s25  ;;  %s3698_s6 = scalar_lea.vmem %s4541_s3, %s2677_s25 }
  0x15   : > { %v216_v5 = vld [vmem:[%s3347_s28] sm:$0xff]  ;;  %v217_v6 = vld [vmem:[%s3347_s28 + $0x8] sm:$0xff]  ;;  %v218_v10 = vld [vmem:[%s3347_s28 + $0x10] sm:$0xff] }
  0x16   : > { %v344_v7 = vld [vmem:[%s3347_s28 + $0x400] sm:$0xff]  ;;  %v472_v8 = vpack.c.bf16 %v217_v6, %v216_v5  ;;  %v345_v9 = vld [vmem:[%s3347_s28 + $0x408] sm:$0xff]  ;;  %v219_v11 = vld [vmem:[%s3347_s28 + $0x18] sm:$0xff] }
  0x17   : > { %v536_v12 = vpack.c.bf16 %v345_v9, %v344_v7  ;;  %v473_v13 = vpack.c.bf16 %v219_v11, %v218_v10  ;;  %v346_v14 = vld [vmem:[%s3347_s28 + $0x410] sm:$0xff]  ;;  %v347_v15 = vld [vmem:[%s3347_s28 + $0x418] sm:$0xff]  ;;  %v220_v16 = vld [vmem:[%s3347_s28 + $0x20] sm:$0xff] }
  0x18   : > { %2944 = vmatprep.mubr.msk.bf16.mxu0 %vm608_vm2, %v472_v8  ;;  %v537_v17 = vpack.c.bf16 %v347_v15, %v346_v14  ;;  %v221_v18 = vld [vmem:[%s3347_s28 + $0x28] sm:$0xff]  ;;  %v348_v19 = vld [vmem:[%s3347_s28 + $0x420] sm:$0xff]  ;;  %v222_v23 = vld [vmem:[%s3347_s28 + $0x30] sm:$0xff] }
  0x19   : > { %v349_v20 = vld [vmem:[%s3347_s28 + $0x428] sm:$0xff]  ;;  %3072 = vmatprep.mubr.msk.bf16.mxu1 %vm608_vm2, %v536_v12  ;;  %2945 = vmatmul.mubr.msk.bf16.vlgmr.msra.gmra.mrb[0].mxu0 %vm608_vm2, %v473_v13  ;;  %v474_v21 = vpack.c.bf16 %v221_v18, %v220_v16  ;;  %v223_v24 = vld [vmem:[%s3347_s28 + $0x38] sm:$0xff]  ;;  %v350_v25 = vld [vmem:[%s3347_s28 + $0x430] sm:$0xff] }
  0x1a   : > { %v538_v22 = vpack.c.bf16 %v349_v20, %v348_v19  ;;  %3073 = vmatmul.mubr.msk.bf16.vlgmr.msra.gmra.mrb[0].mxu1 %vm608_vm2, %v537_v17  ;;  %v351_v26 = vld [vmem:[%s3347_s28 + $0x438] sm:$0xff]  ;;  %v224_v27 = vld [vmem:[%s3347_s28 + $0x40] sm:$0xff]  ;;  %v225_v28 = vld [vmem:[%s3347_s28 + $0x48] sm:$0xff]  ;;  %v475_v31 = vpack.c.bf16 %v223_v24, %v222_v23 }
  0x1b   : > { %2948 = vmatprep.mubr.msk.bf16.mxu0 %vm608_vm2, %v474_v21  ;;  %v352_v29 = vld [vmem:[%s3347_s28 + $0x440] sm:$0xff]  ;;  %v353_v30 = vld [vmem:[%s3347_s28 + $0x448] sm:$0xff]  ;;  %v539_v32 = vpack.c.bf16 %v351_v26, %v350_v25  ;;  %v476_v33 = vpack.c.bf16 %v225_v28, %v224_v27  ;;  %v226_v35 = vld [vmem:[%s3347_s28 + $0x50] sm:$0xff] }
  0x1c   : > { %3076 = vmatprep.mubr.msk.bf16.mxu1 %vm608_vm2, %v538_v22  ;;  %v540_v34 = vpack.c.bf16 %v353_v30, %v352_v29  ;;  %v227_v36 = vld [vmem:[%s3347_s28 + $0x58] sm:$0xff]  ;;  %v354_v37 = vld [vmem:[%s3347_s28 + $0x450] sm:$0xff]  ;;  %v228_v39 = vld [vmem:[%s3347_s28 + $0x60] sm:$0xff] }
  0x1d   : > { %v355_v38 = vld [vmem:[%s3347_s28 + $0x458] sm:$0xff]  ;;  %v229_v40 = vld [vmem:[%s3347_s28 + $0x68] sm:$0xff]  ;;  %v356_v41 = vld [vmem:[%s3347_s28 + $0x460] sm:$0xff]  ;;  %v477_v43 = vpack.c.bf16 %v227_v36, %v226_v35 }
  0x1e   : > { %v357_v42 = vld [vmem:[%s3347_s28 + $0x468] sm:$0xff]  ;;  %v541_v44 = vpack.c.bf16 %v355_v38, %v354_v37  ;;  %v478_v45 = vpack.c.bf16 %v229_v40, %v228_v39  ;;  %v230_v47 = vld [vmem:[%s3347_s28 + $0x70] sm:$0xff]  ;;  %v231_v48 = vld [vmem:[%s3347_s28 + $0x78] sm:$0xff] }
  0x1f   : > { %v542_v46 = vpack.c.bf16 %v357_v42, %v356_v41  ;;  %v358_v49 = vld [vmem:[%s3347_s28 + $0x470] sm:$0xff]  ;;  %v359_v50 = vld [vmem:[%s3347_s28 + $0x478] sm:$0xff]  ;;  %v232_v51 = vld [vmem:[%s3347_s28 + $0x80] sm:$0xff]  ;;  %v479_v55 = vpack.c.bf16 %v231_v48, %v230_v47 }
  0x20   : > { %v233_v52 = vld [vmem:[%s3347_s28 + $0x88] sm:$0xff]  ;;  %v360_v53 = vld [vmem:[%s3347_s28 + $0x480] sm:$0xff]  ;;  %v543_v56 = vpack.c.bf16 %v359_v50, %v358_v49  ;;  %v234_v59 = vld [vmem:[%s3347_s28 + $0x90] sm:$0xff] }
  0x21   : > { %2949 = vmatmul.mubr.msk.bf16.gmra.mrb[4].mxu0 %vm608_vm2, %v475_v31  ;;  %v361_v54 = vld [vmem:[%s3347_s28 + $0x488] sm:$0xff]  ;;  %v480_v57 = vpack.c.bf16 %v233_v52, %v232_v51  ;;  %v235_v60 = vld [vmem:[%s3347_s28 + $0x98] sm:$0xff]  ;;  %v362_v61 = vld [vmem:[%s3347_s28 + $0x490] sm:$0xff] }
  0x22   : > { %3077 = vmatmul.mubr.msk.bf16.gmra.mrb[4].mxu1 %vm608_vm2, %v539_v32  ;;  %2952 = vmatprep.mubr.msk.bf16.mxu0 %vm608_vm2, %v476_v33  ;;  %v544_v58 = vpack.c.bf16 %v361_v54, %v360_v53  ;;  %v363_v62 = vld [vmem:[%s3347_s28 + $0x498] sm:$0xff]  ;;  %v236_v63 = vld [vmem:[%s3347_s28 + $0xa0] sm:$0xff]  ;;  %v237_v0 = vld [vmem:[%s3347_s28 + $0xa8] sm:$0xff]  ;;  %v481_v3 = vpack.c.bf16 %v235_v60, %v234_v59 }
  0x23   : > { %3080 = vmatprep.mubr.msk.bf16.mxu1 %vm608_vm2, %v540_v34  ;;  %v364_v1 = vld [vmem:[%s3347_s28 + $0x4a0] sm:$0xff]  ;;  %v365_v2 = vld [vmem:[%s3347_s28 + $0x4a8] sm:$0xff]  ;;  %v545_v4 = vpack.c.bf16 %v363_v62, %v362_v61  ;;  %v482_v5 = vpack.c.bf16 %v237_v0, %v236_v63  ;;  %v238_v7 = vld [vmem:[%s3347_s28 + $0xb0] sm:$0xff] }
  0x24   : > { %v546_v6 = vpack.c.bf16 %v365_v2, %v364_v1  ;;  %v239_v8 = vld [vmem:[%s3347_s28 + $0xb8] sm:$0xff]  ;;  %v366_v9 = vld [vmem:[%s3347_s28 + $0x4b0] sm:$0xff]  ;;  %v240_v11 = vld [vmem:[%s3347_s28 + $0xc0] sm:$0xff] }
  0x25   : > { %v367_v10 = vld [vmem:[%s3347_s28 + $0x4b8] sm:$0xff]  ;;  %v241_v12 = vld [vmem:[%s3347_s28 + $0xc8] sm:$0xff]  ;;  %v368_v13 = vld [vmem:[%s3347_s28 + $0x4c0] sm:$0xff]  ;;  %v483_v15 = vpack.c.bf16 %v239_v8, %v238_v7 }
  0x26   : > { %v369_v14 = vld [vmem:[%s3347_s28 + $0x4c8] sm:$0xff]  ;;  %v547_v16 = vpack.c.bf16 %v367_v10, %v366_v9  ;;  %v484_v17 = vpack.c.bf16 %v241_v12, %v240_v11  ;;  %v242_v19 = vld [vmem:[%s3347_s28 + $0xd0] sm:$0xff]  ;;  %v243_v20 = vld [vmem:[%s3347_s28 + $0xd8] sm:$0xff] }
  0x27   : > { %v548_v18 = vpack.c.bf16 %v369_v14, %v368_v13  ;;  %v370_v21 = vld [vmem:[%s3347_s28 + $0x4d0] sm:$0xff]  ;;  %v371_v22 = vld [vmem:[%s3347_s28 + $0x4d8] sm:$0xff]  ;;  %v244_v23 = vld [vmem:[%s3347_s28 + $0xe0] sm:$0xff]  ;;  %v485_v27 = vpack.c.bf16 %v243_v20, %v242_v19 }
  0x28   : > { %v245_v24 = vld [vmem:[%s3347_s28 + $0xe8] sm:$0xff]  ;;  %v372_v25 = vld [vmem:[%s3347_s28 + $0x4e0] sm:$0xff]  ;;  %v549_v28 = vpack.c.bf16 %v371_v22, %v370_v21  ;;  %v246_v31 = vld [vmem:[%s3347_s28 + $0xf0] sm:$0xff] }
  0x29   : > { %2953 = vmatmul.mubr.msk.bf16.gmra.mrb[8].mxu0 %vm608_vm2, %v477_v43  ;;  %v373_v26 = vld [vmem:[%s3347_s28 + $0x4e8] sm:$0xff]  ;;  %v486_v29 = vpack.c.bf16 %v245_v24, %v244_v23  ;;  %v247_v32 = vld [vmem:[%s3347_s28 + $0xf8] sm:$0xff]  ;;  %v374_v33 = vld [vmem:[%s3347_s28 + $0x4f0] sm:$0xff] }
  0x2a   : > { %3081 = vmatmul.mubr.msk.bf16.gmra.mrb[8].mxu1 %vm608_vm2, %v541_v44  ;;  %2956 = vmatprep.mubr.msk.bf16.mxu0 %vm608_vm2, %v478_v45  ;;  %v550_v30 = vpack.c.bf16 %v373_v26, %v372_v25  ;;  %v375_v34 = vld [vmem:[%s3347_s28 + $0x4f8] sm:$0xff]  ;;  %v248_v35 = vld [vmem:[%s3347_s28 + $0x100] sm:$0xff]  ;;  %v249_v36 = vld [vmem:[%s3347_s28 + $0x108] sm:$0xff]  ;;  %v487_v39 = vpack.c.bf16 %v247_v32, %v246_v31 }
  0x2b   : > { %3084 = vmatprep.mubr.msk.bf16.mxu1 %vm608_vm2, %v542_v46  ;;  %v376_v37 = vld [vmem:[%s3347_s28 + $0x500] sm:$0xff]  ;;  %v377_v38 = vld [vmem:[%s3347_s28 + $0x508] sm:$0xff]  ;;  %v551_v40 = vpack.c.bf16 %v375_v34, %v374_v33  ;;  %v488_v41 = vpack.c.bf16 %v249_v36, %v248_v35  ;;  %v250_v43 = vld [vmem:[%s3347_s28 + $0x110] sm:$0xff] }
  0x2c   : > { %v552_v42 = vpack.c.bf16 %v377_v38, %v376_v37  ;;  %v251_v44 = vld [vmem:[%s3347_s28 + $0x118] sm:$0xff]  ;;  %v378_v45 = vld [vmem:[%s3347_s28 + $0x510] sm:$0xff]  ;;  %v252_v47 = vld [vmem:[%s3347_s28 + $0x120] sm:$0xff] }
  0x2d   : > { %v379_v46 = vld [vmem:[%s3347_s28 + $0x518] sm:$0xff]  ;;  %v253_v48 = vld [vmem:[%s3347_s28 + $0x128] sm:$0xff]  ;;  %v380_v49 = vld [vmem:[%s3347_s28 + $0x520] sm:$0xff]  ;;  %v489_v51 = vpack.c.bf16 %v251_v44, %v250_v43 }
  0x2e   : > { %v381_v50 = vld [vmem:[%s3347_s28 + $0x528] sm:$0xff]  ;;  %v553_v52 = vpack.c.bf16 %v379_v46, %v378_v45  ;;  %v490_v53 = vpack.c.bf16 %v253_v48, %v252_v47  ;;  %v256_v59 = vld [vmem:[%s3347_s28 + $0x140] sm:$0xff] }
  0x2f   : > { %v554_v54 = vpack.c.bf16 %v381_v50, %v380_v49  ;;  %v257_v60 = vld [vmem:[%s3347_s28 + $0x148] sm:$0xff]  ;;  %v384_v61 = vld [vmem:[%s3347_s28 + $0x540] sm:$0xff] }
  0x30   : > { %v385_v62 = vld [vmem:[%s3347_s28 + $0x548] sm:$0xff]  ;;  %v492_v1 = vpack.c.bf16 %v257_v60, %v256_v59  ;;  %v260_v7 = vld [vmem:[%s3347_s28 + $0x160] sm:$0xff] }
  0x31   : > { %2957 = vmatmul.mubr.msk.bf16.gmra.mrb[12].mxu0 %vm608_vm2, %v479_v55  ;;  %v254_v55 = vld [vmem:[%s3347_s28 + $0x130] sm:$0xff]  ;;  %v556_v2 = vpack.c.bf16 %v385_v62, %v384_v61  ;;  %v261_v8 = vld [vmem:[%s3347_s28 + $0x168] sm:$0xff]  ;;  %v388_v9 = vld [vmem:[%s3347_s28 + $0x560] sm:$0xff] }
  0x32   : > { %3085 = vmatmul.mubr.msk.bf16.gmra.mrb[12].mxu1 %vm608_vm2, %v543_v56  ;;  %2960 = vmatprep.mubr.msk.bf16.mxu0 %vm608_vm2, %v480_v57  ;;  %v255_v56 = vld [vmem:[%s3347_s28 + $0x138] sm:$0xff]  ;;  %v382_v57 = vld [vmem:[%s3347_s28 + $0x530] sm:$0xff]  ;;  %v389_v10 = vld [vmem:[%s3347_s28 + $0x568] sm:$0xff]  ;;  %v494_v13 = vpack.c.bf16 %v261_v8, %v260_v7 }
  0x33   : > { %3088 = vmatprep.mubr.msk.bf16.mxu1 %vm608_vm2, %v544_v58  ;;  %v383_v58 = vld [vmem:[%s3347_s28 + $0x538] sm:$0xff]  ;;  %v491_v63 = vpack.c.bf16 %v255_v56, %v254_v55  ;;  %v558_v14 = vpack.c.bf16 %v389_v10, %v388_v9  ;;  %v264_v19 = vld [vmem:[%s3347_s28 + $0x180] sm:$0xff]  ;;  %v265_v20 = vld [vmem:[%s3347_s28 + $0x188] sm:$0xff] }
  0x34   : > { %v555_v0 = vpack.c.bf16 %v383_v58, %v382_v57  ;;  %v392_v21 = vld [vmem:[%s3347_s28 + $0x580] sm:$0xff]  ;;  %v393_v22 = vld [vmem:[%s3347_s28 + $0x588] sm:$0xff]  ;;  %v496_v25 = vpack.c.bf16 %v265_v20, %v264_v19 }
  0x35   : > { %v560_v26 = vpack.c.bf16 %v393_v22, %v392_v21  ;;  %v268_v31 = vld [vmem:[%s3347_s28 + $0x1a0] sm:$0xff]  ;;  %v269_v32 = vld [vmem:[%s3347_s28 + $0x1a8] sm:$0xff] }
  0x36   : > { %v396_v33 = vld [vmem:[%s3347_s28 + $0x5a0] sm:$0xff]  ;;  %v397_v34 = vld [vmem:[%s3347_s28 + $0x5a8] sm:$0xff]  ;;  %v498_v37 = vpack.c.bf16 %v269_v32, %v268_v31 }
  0x37   : > { %v562_v38 = vpack.c.bf16 %v397_v34, %v396_v33  ;;  %v272_v43 = vld [vmem:[%s3347_s28 + $0x1c0] sm:$0xff]  ;;  %v273_v44 = vld [vmem:[%s3347_s28 + $0x1c8] sm:$0xff] }
  0x38   : > { %v400_v45 = vld [vmem:[%s3347_s28 + $0x5c0] sm:$0xff]  ;;  %v401_v46 = vld [vmem:[%s3347_s28 + $0x5c8] sm:$0xff]  ;;  %v500_v49 = vpack.c.bf16 %v273_v44, %v272_v43 }
  0x39   : > { %2961 = vmatmul.mubr.msk.bf16.gmra.mrb[16].mxu0 %vm608_vm2, %v481_v3  ;;  %v258_v3 = vld [vmem:[%s3347_s28 + $0x150] sm:$0xff]  ;;  %v564_v50 = vpack.c.bf16 %v401_v46, %v400_v45  ;;  %v276_v55 = vld [vmem:[%s3347_s28 + $0x1e0] sm:$0xff]  ;;  %v277_v56 = vld [vmem:[%s3347_s28 + $0x1e8] sm:$0xff] }
  0x3a   : > { %3089 = vmatmul.mubr.msk.bf16.gmra.mrb[16].mxu1 %vm608_vm2, %v545_v4  ;;  %2964 = vmatprep.mubr.msk.bf16.mxu0 %vm608_vm2, %v482_v5  ;;  %v259_v4 = vld [vmem:[%s3347_s28 + $0x158] sm:$0xff]  ;;  %v386_v5 = vld [vmem:[%s3347_s28 + $0x550] sm:$0xff]  ;;  %v404_v57 = vld [vmem:[%s3347_s28 + $0x5e0] sm:$0xff]  ;;  %v502_v61 = vpack.c.bf16 %v277_v56, %v276_v55 }
  0x3b   : > { %3092 = vmatprep.mubr.msk.bf16.mxu1 %vm608_vm2, %v546_v6  ;;  %v387_v6 = vld [vmem:[%s3347_s28 + $0x558] sm:$0xff]  ;;  %v493_v11 = vpack.c.bf16 %v259_v4, %v258_v3  ;;  %v405_v58 = vld [vmem:[%s3347_s28 + $0x5e8] sm:$0xff]  ;;  %v280_v3 = vld [vmem:[%s3347_s28 + $0x200] sm:$0xff] }
  0x3c   : > { %v557_v12 = vpack.c.bf16 %v387_v6, %v386_v5  ;;  %v566_v62 = vpack.c.bf16 %v405_v58, %v404_v57  ;;  %v281_v4 = vld [vmem:[%s3347_s28 + $0x208] sm:$0xff]  ;;  %v408_v5 = vld [vmem:[%s3347_s28 + $0x600] sm:$0xff] }
  0x3d   : > { %v409_v6 = vld [vmem:[%s3347_s28 + $0x608] sm:$0xff]  ;;  %v504_v9 = vpack.c.bf16 %v281_v4, %v280_v3 }
  0x3e   : > { %v568_v10 = vpack.c.bf16 %v409_v6, %v408_v5 }
  0x41   : > { %2965 = vmatmul.mubr.msk.bf16.gmra.mrb[20].mxu0 %vm608_vm2, %v483_v15  ;;  %v262_v15 = vld [vmem:[%s3347_s28 + $0x170] sm:$0xff] }
  0x42   : > { %3093 = vmatmul.mubr.msk.bf16.gmra.mrb[20].mxu1 %vm608_vm2, %v547_v16  ;;  %2968 = vmatprep.mubr.msk.bf16.mxu0 %vm608_vm2, %v484_v17  ;;  %v263_v16 = vld [vmem:[%s3347_s28 + $0x178] sm:$0xff]  ;;  %v390_v17 = vld [vmem:[%s3347_s28 + $0x570] sm:$0xff] }
  0x43   : > { %3096 = vmatprep.mubr.msk.bf16.mxu1 %vm608_vm2, %v548_v18  ;;  %v391_v18 = vld [vmem:[%s3347_s28 + $0x578] sm:$0xff]  ;;  %v495_v23 = vpack.c.bf16 %v263_v16, %v262_v15  ;;  %v284_v15 = vld [vmem:[%s3347_s28 + $0x220] sm:$0xff]  ;;  %v285_v16 = vld [vmem:[%s3347_s28 + $0x228] sm:$0xff] }
  0x44   : > { %v559_v24 = vpack.c.bf16 %v391_v18, %v390_v17  ;;  %v412_v17 = vld [vmem:[%s3347_s28 + $0x620] sm:$0xff]  ;;  %v413_v18 = vld [vmem:[%s3347_s28 + $0x628] sm:$0xff]  ;;  %v506_v21 = vpack.c.bf16 %v285_v16, %v284_v15 }
  0x45   : > { %v570_v22 = vpack.c.bf16 %v413_v18, %v412_v17 }
  0x49   : > { %2969 = vmatmul.mubr.msk.bf16.gmra.mrb[24].mxu0 %vm608_vm2, %v485_v27  ;;  %v266_v27 = vld [vmem:[%s3347_s28 + $0x190] sm:$0xff] }
  0x4a   : > { %3097 = vmatmul.mubr.msk.bf16.gmra.mrb[24].mxu1 %vm608_vm2, %v549_v28  ;;  %2972 = vmatprep.mubr.msk.bf16.mxu0 %vm608_vm2, %v486_v29  ;;  %v267_v28 = vld [vmem:[%s3347_s28 + $0x198] sm:$0xff]  ;;  %v394_v29 = vld [vmem:[%s3347_s28 + $0x590] sm:$0xff] }
  0x4b   : > { %3100 = vmatprep.mubr.msk.bf16.mxu1 %vm608_vm2, %v550_v30  ;;  %v395_v30 = vld [vmem:[%s3347_s28 + $0x598] sm:$0xff]  ;;  %v497_v35 = vpack.c.bf16 %v267_v28, %v266_v27  ;;  %v288_v27 = vld [vmem:[%s3347_s28 + $0x240] sm:$0xff]  ;;  %v289_v28 = vld [vmem:[%s3347_s28 + $0x248] sm:$0xff] }
  0x4c   : > { %v561_v36 = vpack.c.bf16 %v395_v30, %v394_v29  ;;  %v416_v29 = vld [vmem:[%s3347_s28 + $0x640] sm:$0xff]  ;;  %v417_v30 = vld [vmem:[%s3347_s28 + $0x648] sm:$0xff]  ;;  %v508_v33 = vpack.c.bf16 %v289_v28, %v288_v27 }
  0x4d   : > { %v572_v34 = vpack.c.bf16 %v417_v30, %v416_v29 }
  0x51   : > { %2973 = vmatmul.mubr.msk.bf16.gmra.mrb[28].mxu0 %vm608_vm2, %v487_v39  ;;  %v270_v39 = vld [vmem:[%s3347_s28 + $0x1b0] sm:$0xff] }
  0x52   : > { %3101 = vmatmul.mubr.msk.bf16.gmra.mrb[28].mxu1 %vm608_vm2, %v551_v40  ;;  %2976 = vmatprep.mubr.msk.bf16.mxu0 %vm608_vm2, %v488_v41  ;;  %v271_v40 = vld [vmem:[%s3347_s28 + $0x1b8] sm:$0xff]  ;;  %v398_v41 = vld [vmem:[%s3347_s28 + $0x5b0] sm:$0xff] }
  0x53   : > { %3104 = vmatprep.mubr.msk.bf16.mxu1 %vm608_vm2, %v552_v42  ;;  %v399_v42 = vld [vmem:[%s3347_s28 + $0x5b8] sm:$0xff]  ;;  %v499_v47 = vpack.c.bf16 %v271_v40, %v270_v39  ;;  %v292_v39 = vld [vmem:[%s3347_s28 + $0x260] sm:$0xff]  ;;  %v293_v40 = vld [vmem:[%s3347_s28 + $0x268] sm:$0xff] }
  0x54   : > { %v563_v48 = vpack.c.bf16 %v399_v42, %v398_v41  ;;  %v420_v41 = vld [vmem:[%s3347_s28 + $0x660] sm:$0xff]  ;;  %v421_v42 = vld [vmem:[%s3347_s28 + $0x668] sm:$0xff]  ;;  %v510_v45 = vpack.c.bf16 %v293_v40, %v292_v39 }
  0x55   : > { %v574_v46 = vpack.c.bf16 %v421_v42, %v420_v41 }
  0x59   : > { %2977 = vmatmul.mubr.msk.bf16.gmra.mrb[32].mxu0 %vm608_vm2, %v489_v51  ;;  %v274_v51 = vld [vmem:[%s3347_s28 + $0x1d0] sm:$0xff] }
  0x5a   : > { %3105 = vmatmul.mubr.msk.bf16.gmra.mrb[32].mxu1 %vm608_vm2, %v553_v52  ;;  %2980 = vmatprep.mubr.msk.bf16.mxu0 %vm608_vm2, %v490_v53  ;;  %v275_v52 = vld [vmem:[%s3347_s28 + $0x1d8] sm:$0xff]  ;;  %v402_v53 = vld [vmem:[%s3347_s28 + $0x5d0] sm:$0xff] }
  0x5b   : > { %3108 = vmatprep.mubr.msk.bf16.mxu1 %vm608_vm2, %v554_v54  ;;  %v403_v54 = vld [vmem:[%s3347_s28 + $0x5d8] sm:$0xff]  ;;  %v501_v59 = vpack.c.bf16 %v275_v52, %v274_v51  ;;  %v296_v51 = vld [vmem:[%s3347_s28 + $0x280] sm:$0xff]  ;;  %v297_v52 = vld [vmem:[%s3347_s28 + $0x288] sm:$0xff] }
  0x5c   : > { %v565_v60 = vpack.c.bf16 %v403_v54, %v402_v53  ;;  %v424_v53 = vld [vmem:[%s3347_s28 + $0x680] sm:$0xff]  ;;  %v425_v54 = vld [vmem:[%s3347_s28 + $0x688] sm:$0xff]  ;;  %v512_v57 = vpack.c.bf16 %v297_v52, %v296_v51 }
  0x5d   : > { %v576_v58 = vpack.c.bf16 %v425_v54, %v424_v53 }
  0x61   : > { %2981 = vmatmul.mubr.msk.bf16.gmra.mrb[36].mxu0 %vm608_vm2, %v491_v63  ;;  %v278_v63 = vld [vmem:[%s3347_s28 + $0x1f0] sm:$0xff] }
  0x62   : > { %3109 = vmatmul.mubr.msk.bf16.gmra.mrb[36].mxu1 %vm608_vm2, %v555_v0  ;;  %2984 = vmatprep.mubr.msk.bf16.mxu0 %vm608_vm2, %v492_v1  ;;  %v279_v0 = vld [vmem:[%s3347_s28 + $0x1f8] sm:$0xff]  ;;  %v406_v1 = vld [vmem:[%s3347_s28 + $0x5f0] sm:$0xff] }
  0x63   : > { %3112 = vmatprep.mubr.msk.bf16.mxu1 %vm608_vm2, %v556_v2  ;;  %v407_v2 = vld [vmem:[%s3347_s28 + $0x5f8] sm:$0xff]  ;;  %v503_v7 = vpack.c.bf16 %v279_v0, %v278_v63  ;;  %v300_v63 = vld [vmem:[%s3347_s28 + $0x2a0] sm:$0xff]  ;;  %v301_v0 = vld [vmem:[%s3347_s28 + $0x2a8] sm:$0xff] }
  0x64   : > { %v567_v8 = vpack.c.bf16 %v407_v2, %v406_v1  ;;  %v428_v1 = vld [vmem:[%s3347_s28 + $0x6a0] sm:$0xff]  ;;  %v429_v2 = vld [vmem:[%s3347_s28 + $0x6a8] sm:$0xff]  ;;  %v514_v5 = vpack.c.bf16 %v301_v0, %v300_v63 }
  0x65   : > { %v578_v6 = vpack.c.bf16 %v429_v2, %v428_v1 }
  0x69   : > { %2985 = vmatmul.mubr.msk.bf16.gmra.mrb[40].mxu0 %vm608_vm2, %v493_v11  ;;  %v282_v11 = vld [vmem:[%s3347_s28 + $0x210] sm:$0xff] }
  0x6a   : > { %3113 = vmatmul.mubr.msk.bf16.gmra.mrb[40].mxu1 %vm608_vm2, %v557_v12  ;;  %2988 = vmatprep.mubr.msk.bf16.mxu0 %vm608_vm2, %v494_v13  ;;  %v283_v12 = vld [vmem:[%s3347_s28 + $0x218] sm:$0xff]  ;;  %v410_v13 = vld [vmem:[%s3347_s28 + $0x610] sm:$0xff] }
  0x6b   : > { %3116 = vmatprep.mubr.msk.bf16.mxu1 %vm608_vm2, %v558_v14  ;;  %v411_v14 = vld [vmem:[%s3347_s28 + $0x618] sm:$0xff]  ;;  %v505_v19 = vpack.c.bf16 %v283_v12, %v282_v11  ;;  %v304_v11 = vld [vmem:[%s3347_s28 + $0x2c0] sm:$0xff]  ;;  %v305_v12 = vld [vmem:[%s3347_s28 + $0x2c8] sm:$0xff] }
  0x6c   : > { %v569_v20 = vpack.c.bf16 %v411_v14, %v410_v13  ;;  %v432_v13 = vld [vmem:[%s3347_s28 + $0x6c0] sm:$0xff]  ;;  %v433_v14 = vld [vmem:[%s3347_s28 + $0x6c8] sm:$0xff]  ;;  %v516_v17 = vpack.c.bf16 %v305_v12, %v304_v11 }
  0x6d   : > { %v580_v18 = vpack.c.bf16 %v433_v14, %v432_v13 }
  0x71   : > { %2989 = vmatmul.mubr.msk.bf16.gmra.mrb[44].mxu0 %vm608_vm2, %v495_v23  ;;  %v286_v23 = vld [vmem:[%s3347_s28 + $0x230] sm:$0xff] }
  0x72   : > { %3117 = vmatmul.mubr.msk.bf16.gmra.mrb[44].mxu1 %vm608_vm2, %v559_v24  ;;  %2992 = vmatprep.mubr.msk.bf16.mxu0 %vm608_vm2, %v496_v25  ;;  %v287_v24 = vld [vmem:[%s3347_s28 + $0x238] sm:$0xff]  ;;  %v414_v25 = vld [vmem:[%s3347_s28 + $0x630] sm:$0xff] }
  0x73   : > { %3120 = vmatprep.mubr.msk.bf16.mxu1 %vm608_vm2, %v560_v26  ;;  %v415_v26 = vld [vmem:[%s3347_s28 + $0x638] sm:$0xff]  ;;  %v507_v31 = vpack.c.bf16 %v287_v24, %v286_v23  ;;  %v308_v23 = vld [vmem:[%s3347_s28 + $0x2e0] sm:$0xff]  ;;  %v309_v24 = vld [vmem:[%s3347_s28 + $0x2e8] sm:$0xff] }
  0x74   : > { %v571_v32 = vpack.c.bf16 %v415_v26, %v414_v25  ;;  %v436_v25 = vld [vmem:[%s3347_s28 + $0x6e0] sm:$0xff]  ;;  %v437_v26 = vld [vmem:[%s3347_s28 + $0x6e8] sm:$0xff]  ;;  %v518_v29 = vpack.c.bf16 %v309_v24, %v308_v23 }
  0x75   : > { %v582_v30 = vpack.c.bf16 %v437_v26, %v436_v25  ;;  %v456_v23 = vld [vmem:[%s3347_s28 + $0x780] sm:$0xff]  ;;  %v457_v24 = vld [vmem:[%s3347_s28 + $0x788] sm:$0xff] }
  0x79   : > { %2993 = vmatmul.mubr.msk.bf16.gmra.mrb[48].mxu0 %vm608_vm2, %v497_v35  ;;  %v290_v35 = vld [vmem:[%s3347_s28 + $0x250] sm:$0xff] }
  0x7a   : > { %3121 = vmatmul.mubr.msk.bf16.gmra.mrb[48].mxu1 %vm608_vm2, %v561_v36  ;;  %2996 = vmatprep.mubr.msk.bf16.mxu0 %vm608_vm2, %v498_v37  ;;  %v291_v36 = vld [vmem:[%s3347_s28 + $0x258] sm:$0xff]  ;;  %v418_v37 = vld [vmem:[%s3347_s28 + $0x650] sm:$0xff] }
  0x7b   : > { %3124 = vmatprep.mubr.msk.bf16.mxu1 %vm608_vm2, %v562_v38  ;;  %v419_v38 = vld [vmem:[%s3347_s28 + $0x658] sm:$0xff]  ;;  %v509_v43 = vpack.c.bf16 %v291_v36, %v290_v35  ;;  %v312_v35 = vld [vmem:[%s3347_s28 + $0x300] sm:$0xff]  ;;  %v313_v36 = vld [vmem:[%s3347_s28 + $0x308] sm:$0xff] }
  0x7c   : > { %v573_v44 = vpack.c.bf16 %v419_v38, %v418_v37  ;;  %v440_v37 = vld [vmem:[%s3347_s28 + $0x700] sm:$0xff]  ;;  %v441_v38 = vld [vmem:[%s3347_s28 + $0x708] sm:$0xff]  ;;  %v520_v41 = vpack.c.bf16 %v313_v36, %v312_v35 }
  0x7d   : > { %v584_v42 = vpack.c.bf16 %v441_v38, %v440_v37 }
  0x81   : > { %2997 = vmatmul.mubr.msk.bf16.gmra.mrb[52].mxu0 %vm608_vm2, %v499_v47  ;;  %v294_v47 = vld [vmem:[%s3347_s28 + $0x270] sm:$0xff] }
  0x82   : > { %3125 = vmatmul.mubr.msk.bf16.gmra.mrb[52].mxu1 %vm608_vm2, %v563_v48  ;;  %3000 = vmatprep.mubr.msk.bf16.mxu0 %vm608_vm2, %v500_v49  ;;  %v295_v48 = vld [vmem:[%s3347_s28 + $0x278] sm:$0xff]  ;;  %v422_v49 = vld [vmem:[%s3347_s28 + $0x670] sm:$0xff] }
  0x83   : > { %3128 = vmatprep.mubr.msk.bf16.mxu1 %vm608_vm2, %v564_v50  ;;  %v423_v50 = vld [vmem:[%s3347_s28 + $0x678] sm:$0xff]  ;;  %v511_v55 = vpack.c.bf16 %v295_v48, %v294_v47  ;;  %v316_v47 = vld [vmem:[%s3347_s28 + $0x320] sm:$0xff]  ;;  %v317_v48 = vld [vmem:[%s3347_s28 + $0x328] sm:$0xff] }
  0x84   : > { %v575_v56 = vpack.c.bf16 %v423_v50, %v422_v49  ;;  %v444_v49 = vld [vmem:[%s3347_s28 + $0x720] sm:$0xff]  ;;  %v445_v50 = vld [vmem:[%s3347_s28 + $0x728] sm:$0xff]  ;;  %v522_v53 = vpack.c.bf16 %v317_v48, %v316_v47 }
  0x85   : > { %v586_v54 = vpack.c.bf16 %v445_v50, %v444_v49 }
  0x89   : > { %3001 = vmatmul.mubr.msk.bf16.gmra.mrb[56].mxu0 %vm608_vm2, %v501_v59  ;;  %v298_v59 = vld [vmem:[%s3347_s28 + $0x290] sm:$0xff] }
  0x8a   : > { %3129 = vmatmul.mubr.msk.bf16.gmra.mrb[56].mxu1 %vm608_vm2, %v565_v60  ;;  %3004 = vmatprep.mubr.msk.bf16.mxu0 %vm608_vm2, %v502_v61  ;;  %v299_v60 = vld [vmem:[%s3347_s28 + $0x298] sm:$0xff]  ;;  %v426_v61 = vld [vmem:[%s3347_s28 + $0x690] sm:$0xff] }
  0x8b   : > { %3132 = vmatprep.mubr.msk.bf16.mxu1 %vm608_vm2, %v566_v62  ;;  %v427_v62 = vld [vmem:[%s3347_s28 + $0x698] sm:$0xff]  ;;  %v513_v3 = vpack.c.bf16 %v299_v60, %v298_v59  ;;  %v320_v59 = vld [vmem:[%s3347_s28 + $0x340] sm:$0xff]  ;;  %v321_v60 = vld [vmem:[%s3347_s28 + $0x348] sm:$0xff] }
  0x8c   : > { %v577_v4 = vpack.c.bf16 %v427_v62, %v426_v61  ;;  %v448_v61 = vld [vmem:[%s3347_s28 + $0x740] sm:$0xff]  ;;  %v449_v62 = vld [vmem:[%s3347_s28 + $0x748] sm:$0xff]  ;;  %v524_v1 = vpack.c.bf16 %v321_v60, %v320_v59 }
  0x8d   : > { %v588_v2 = vpack.c.bf16 %v449_v62, %v448_v61  ;;  %v460_v59 = vld [vmem:[%s3347_s28 + $0x7a0] sm:$0xff]  ;;  %v461_v60 = vld [vmem:[%s3347_s28 + $0x7a8] sm:$0xff] }
  0x91   : > { %3005 = vmatmul.mubr.msk.bf16.gmra.mrb[60].mxu0 %vm608_vm2, %v503_v7  ;;  %v302_v7 = vld [vmem:[%s3347_s28 + $0x2b0] sm:$0xff] }
  0x92   : > { %3133 = vmatmul.mubr.msk.bf16.gmra.mrb[60].mxu1 %vm608_vm2, %v567_v8  ;;  %3008 = vmatprep.mubr.msk.bf16.mxu0 %vm608_vm2, %v504_v9  ;;  %v303_v8 = vld [vmem:[%s3347_s28 + $0x2b8] sm:$0xff]  ;;  %v430_v9 = vld [vmem:[%s3347_s28 + $0x6b0] sm:$0xff] }
  0x93   : > { %3136 = vmatprep.mubr.msk.bf16.mxu1 %vm608_vm2, %v568_v10  ;;  %v431_v10 = vld [vmem:[%s3347_s28 + $0x6b8] sm:$0xff]  ;;  %v515_v15 = vpack.c.bf16 %v303_v8, %v302_v7  ;;  %v324_v7 = vld [vmem:[%s3347_s28 + $0x360] sm:$0xff]  ;;  %v325_v8 = vld [vmem:[%s3347_s28 + $0x368] sm:$0xff] }
  0x94   : > { %v579_v16 = vpack.c.bf16 %v431_v10, %v430_v9  ;;  %v452_v9 = vld [vmem:[%s3347_s28 + $0x760] sm:$0xff]  ;;  %v453_v10 = vld [vmem:[%s3347_s28 + $0x768] sm:$0xff]  ;;  %v526_v13 = vpack.c.bf16 %v325_v8, %v324_v7 }
  0x95   : > { %v590_v14 = vpack.c.bf16 %v453_v10, %v452_v9 }
  0x99   : > { %3009 = vmatmul.mubr.msk.bf16.gmra.mrb[64].mxu0 %vm608_vm2, %v505_v19  ;;  %v306_v19 = vld [vmem:[%s3347_s28 + $0x2d0] sm:$0xff] }
  0x9a   : > { %3137 = vmatmul.mubr.msk.bf16.gmra.mrb[64].mxu1 %vm608_vm2, %v569_v20  ;;  %3012 = vmatprep.mubr.msk.bf16.mxu0 %vm608_vm2, %v506_v21  ;;  %v307_v20 = vld [vmem:[%s3347_s28 + $0x2d8] sm:$0xff]  ;;  %v434_v21 = vld [vmem:[%s3347_s28 + $0x6d0] sm:$0xff] }
  0x9b   : > { %3140 = vmatprep.mubr.msk.bf16.mxu1 %vm608_vm2, %v570_v22  ;;  %v435_v22 = vld [vmem:[%s3347_s28 + $0x6d8] sm:$0xff]  ;;  %v517_v27 = vpack.c.bf16 %v307_v20, %v306_v19  ;;  %v328_v20 = vld [vmem:[%s3347_s28 + $0x380] sm:$0xff] }
  0x9c   : > { %v581_v28 = vpack.c.bf16 %v435_v22, %v434_v21  ;;  %v455_v19 = vld [vmem:[%s3347_s28 + $0x778] sm:$0xff]  ;;  %v329_v21 = vld [vmem:[%s3347_s28 + $0x388] sm:$0xff] }
  0xa1   : > { %3013 = vmatmul.mubr.msk.bf16.gmra.mrb[68].mxu0 %vm608_vm2, %v507_v31  ;;  %v310_v31 = vld [vmem:[%s3347_s28 + $0x2f0] sm:$0xff] }
  0xa2   : > { %3141 = vmatmul.mubr.msk.bf16.gmra.mrb[68].mxu1 %vm608_vm2, %v571_v32  ;;  %3016 = vmatprep.mubr.msk.bf16.mxu0 %vm608_vm2, %v508_v33  ;;  %v311_v32 = vld [vmem:[%s3347_s28 + $0x2f8] sm:$0xff]  ;;  %v438_v33 = vld [vmem:[%s3347_s28 + $0x6f0] sm:$0xff] }
  0xa3   : > { %3144 = vmatprep.mubr.msk.bf16.mxu1 %vm608_vm2, %v572_v34  ;;  %v439_v34 = vld [vmem:[%s3347_s28 + $0x6f8] sm:$0xff]  ;;  %v519_v39 = vpack.c.bf16 %v311_v32, %v310_v31 }
  0xa4   : > { %v583_v40 = vpack.c.bf16 %v439_v34, %v438_v33  ;;  %v528_v34 = vpack.c.bf16 %v329_v21, %v328_v20 }
  0xa9   : > { %3017 = vmatmul.mubr.msk.bf16.gmra.mrb[72].mxu0 %vm608_vm2, %v509_v43  ;;  %v314_v43 = vld [vmem:[%s3347_s28 + $0x310] sm:$0xff] }
  0xaa   : > { %3145 = vmatmul.mubr.msk.bf16.gmra.mrb[72].mxu1 %vm608_vm2, %v573_v44  ;;  %3020 = vmatprep.mubr.msk.bf16.mxu0 %vm608_vm2, %v510_v45  ;;  %v315_v44 = vld [vmem:[%s3347_s28 + $0x318] sm:$0xff]  ;;  %v442_v45 = vld [vmem:[%s3347_s28 + $0x710] sm:$0xff] }
  0xab   : > { %3148 = vmatprep.mubr.msk.bf16.mxu1 %vm608_vm2, %v574_v46  ;;  %v443_v46 = vld [vmem:[%s3347_s28 + $0x718] sm:$0xff]  ;;  %v521_v51 = vpack.c.bf16 %v315_v44, %v314_v43 }
  0xac   : > { %v585_v52 = vpack.c.bf16 %v443_v46, %v442_v45 }
  0xb1   : > { %3021 = vmatmul.mubr.msk.bf16.gmra.mrb[76].mxu0 %vm608_vm2, %v511_v55  ;;  %v318_v55 = vld [vmem:[%s3347_s28 + $0x330] sm:$0xff] }
  0xb2   : > { %3149 = vmatmul.mubr.msk.bf16.gmra.mrb[76].mxu1 %vm608_vm2, %v575_v56  ;;  %3024 = vmatprep.mubr.msk.bf16.mxu0 %vm608_vm2, %v512_v57  ;;  %v319_v56 = vld [vmem:[%s3347_s28 + $0x338] sm:$0xff]  ;;  %v446_v57 = vld [vmem:[%s3347_s28 + $0x730] sm:$0xff] }
  0xb3   : > { %3152 = vmatprep.mubr.msk.bf16.mxu1 %vm608_vm2, %v576_v58  ;;  %v447_v58 = vld [vmem:[%s3347_s28 + $0x738] sm:$0xff]  ;;  %v523_v63 = vpack.c.bf16 %v319_v56, %v318_v55  ;;  %v332_v56 = vld [vmem:[%s3347_s28 + $0x3a0] sm:$0xff] }
  0xb4   : > { %v587_v0 = vpack.c.bf16 %v447_v58, %v446_v57  ;;  %v459_v55 = vld [vmem:[%s3347_s28 + $0x798] sm:$0xff]  ;;  %v333_v57 = vld [vmem:[%s3347_s28 + $0x3a8] sm:$0xff] }
  0xb9   : > { %3025 = vmatmul.mubr.msk.bf16.gmra.mrb[80].mxu0 %vm608_vm2, %v513_v3  ;;  %v322_v3 = vld [vmem:[%s3347_s28 + $0x350] sm:$0xff] }
  0xba   : > { %3153 = vmatmul.mubr.msk.bf16.gmra.mrb[80].mxu1 %vm608_vm2, %v577_v4  ;;  %3028 = vmatprep.mubr.msk.bf16.mxu0 %vm608_vm2, %v514_v5  ;;  %v323_v4 = vld [vmem:[%s3347_s28 + $0x358] sm:$0xff]  ;;  %v450_v5 = vld [vmem:[%s3347_s28 + $0x750] sm:$0xff] }
  0xbb   : > { %3156 = vmatprep.mubr.msk.bf16.mxu1 %vm608_vm2, %v578_v6  ;;  %v451_v6 = vld [vmem:[%s3347_s28 + $0x758] sm:$0xff]  ;;  %v525_v11 = vpack.c.bf16 %v323_v4, %v322_v3 }
  0xbc   : > { %v589_v12 = vpack.c.bf16 %v451_v6, %v450_v5  ;;  %v530_v6 = vpack.c.bf16 %v333_v57, %v332_v56 }
  0xc1   : > { %3029 = vmatmul.mubr.msk.bf16.gmra.mrb[84].mxu0 %vm608_vm2, %v515_v15  ;;  %v3679_v15 = vld [vmem:[%s4540_s2] ss:$0 sm:$0xff] }
  0xc2   : > { %3157 = vmatmul.mubr.msk.bf16.gmra.mrb[84].mxu1 %vm608_vm2, %v579_v16  ;;  %3032 = vmatprep.mubr.msk.bf16.mxu0 %vm608_vm2, %v516_v17  ;;  %v326_v16 = vld [vmem:[%s3347_s28 + $0x370] sm:$0xff]  ;;  %v327_v17 = vld [vmem:[%s3347_s28 + $0x378] sm:$0xff] }
  0xc3   : > { %3160 = vmatprep.mubr.msk.bf16.mxu1 %vm608_vm2, %v580_v18  ;;  %v454_v18 = vld [vmem:[%s3347_s28 + $0x770] sm:$0xff] }
  0xc4   : > { %v591_v33 = vpack.c.bf16 %v455_v19, %v454_v18 }
  0xc9   : > { %3033 = vmatmul.mubr.msk.bf16.gmra.mrb[88].mxu0 %vm608_vm2, %v517_v27 }
  0xca   : > { %3161 = vmatmul.mubr.msk.bf16.gmra.mrb[88].mxu1 %vm608_vm2, %v581_v28  ;;  %3036 = vmatprep.mubr.msk.bf16.mxu0 %vm608_vm2, %v518_v29  ;;  %v527_v28 = vpack.c.bf16 %v327_v17, %v326_v16 }
  0xcb   : > { %3164 = vmatprep.mubr.msk.bf16.mxu1 %vm608_vm2, %v582_v30 }
  0xd1   : > { %3037 = vmatmul.mubr.msk.bf16.gmra.mrb[92].mxu0 %vm608_vm2, %v519_v39 }
  0xd2   : > { %3165 = vmatmul.mubr.msk.bf16.gmra.mrb[92].mxu1 %vm608_vm2, %v583_v40  ;;  %3040 = vmatprep.mubr.msk.bf16.mxu0 %vm608_vm2, %v520_v41  ;;  %v592_v40 = vpack.c.bf16 %v457_v24, %v456_v23  ;;  %v334_v24 = vld [vmem:[%s3347_s28 + $0x3b0] sm:$0xff] }
  0xd3   : > { %3168 = vmatprep.mubr.msk.bf16.mxu1 %vm608_vm2, %v584_v42 }
  0xd9   : > { %3041 = vmatmul.mubr.msk.bf16.gmra.mrb[96].mxu0 %vm608_vm2, %v521_v51  ;;  %v330_v51 = vld [vmem:[%s3347_s28 + $0x390] sm:$0xff] }
  0xda   : > { %3169 = vmatmul.mubr.msk.bf16.gmra.mrb[96].mxu1 %vm608_vm2, %v585_v52  ;;  %3044 = vmatprep.mubr.msk.bf16.mxu0 %vm608_vm2, %v522_v53  ;;  %v331_v52 = vld [vmem:[%s3347_s28 + $0x398] sm:$0xff]  ;;  %v458_v53 = vld [vmem:[%s3347_s28 + $0x790] sm:$0xff] }
  0xdb   : > { %3172 = vmatprep.mubr.msk.bf16.mxu1 %vm608_vm2, %v586_v54  ;;  %v593_v5 = vpack.c.bf16 %v459_v55, %v458_v53 }
  0xe1   : > { %3045 = vmatmul.mubr.msk.bf16.gmra.mrb[100].mxu0 %vm608_vm2, %v523_v63 }
  0xe2   : > { %3173 = vmatmul.mubr.msk.bf16.gmra.mrb[100].mxu1 %vm608_vm2, %v587_v0  ;;  %3048 = vmatprep.mubr.msk.bf16.mxu0 %vm608_vm2, %v524_v1  ;;  %v529_v0 = vpack.c.bf16 %v331_v52, %v330_v51 }
  0xe3   : > { %3176 = vmatprep.mubr.msk.bf16.mxu1 %vm608_vm2, %v588_v2 }
  0xe9   : > { %3049 = vmatmul.mubr.msk.bf16.gmra.mrb[104].mxu0 %vm608_vm2, %v525_v11 }
  0xea   : > { %3177 = vmatmul.mubr.msk.bf16.gmra.mrb[104].mxu1 %vm608_vm2, %v589_v12  ;;  %3052 = vmatprep.mubr.msk.bf16.mxu0 %vm608_vm2, %v526_v13  ;;  %v594_v12 = vpack.c.bf16 %v461_v60, %v460_v59  ;;  %v338_v60 = vld [vmem:[%s3347_s28 + $0x3d0] sm:$0xff] }
  0xeb   : > { %3180 = vmatprep.mubr.msk.bf16.mxu1 %vm608_vm2, %v590_v14 }
  0xec   : > { %v2946_v22 = vpop.f32.mrb[0].mxu0 }
  0xed   : > { %v1043_v25 = vadd.f32 %v2946_v22, %v3679_v15  ;;  %v3074_v26 = vpop.f32.mrb[0].mxu1  ;;  %v1034_v27 = vpop.f32.mrb[1].mxu0 }
  0xee   : > { %v1555_v29 = vadd.f32 %v3074_v26, %v3679_v15  ;;  %v1035_v30 = vadd.f32 %v3679_v15, %v1034_v27  ;;  %v1546_v31 = vpop.f32.mrb[1].mxu1  ;;  %v2947_v32 = vpop.f32.mrb[2].mxu0  ;;  %v462_v26 = vld [vmem:[%s3347_s28 + $0x7b0] sm:$0xff] }
  0xef   : > { %v2059_v35 = vmax.f32 %v1043_v25, 0.0  ;;  %v1547_v36 = vadd.f32 %v3679_v15, %v1546_v31  ;;  %v1046_v37 = vadd.f32 %v2947_v32, %v3679_v15  ;;  %v3075_v38 = vpop.f32.mrb[2].mxu1  ;;  %v1037_v39 = vpop.f32.mrb[3].mxu0  ;;  %v335_v25 = vld [vmem:[%s3347_s28 + $0x3b8] sm:$0xff]  ;;  %v464_v32 = vld [vmem:[%s3347_s28 + $0x7c0] sm:$0xff] }
  0xf0   : > { %v2187_v41 = vmax.f32 %v1555_v29, 0.0  ;;  %v2057_v42 = vmax.f32 %v1035_v30, 0.0  ;;  %v1558_v43 = vadd.f32 %v3075_v38, %v3679_v15  ;;  %v1038_v44 = vadd.f32 %v3679_v15, %v1037_v39  ;;  %v1549_v45 = vpop.f32.mrb[3].mxu1  ;;  %v336_v29 = vld [vmem:[%s3347_s28 + $0x3c0] sm:$0xff]  ;;  %v337_v30 = vld [vmem:[%s3347_s28 + $0x3c8] sm:$0xff] }
  0xf1   : > { %2316 = vst.msk [vmem:[%s3698_s6 + $0x10] sm:$0xff] %vm2313_vm3, %v2059_v35  ;;  %v2185_v46 = vmax.f32 %v1547_v36, 0.0  ;;  %v2060_v47 = vmax.f32 %v1046_v37, 0.0  ;;  %v1550_v48 = vadd.f32 %v3679_v15, %v1549_v45  ;;  %3053 = vmatmul.mubr.msk.bf16.gmra.mrb[108].mxu0 %vm608_vm2, %v527_v28  ;;  %v463_v28 = vld [vmem:[%s3347_s28 + $0x7b8] sm:$0xff]  ;;  %v531_v37 = vpack.c.bf16 %v335_v25, %v334_v24 }
  0xf2   : > { %2444 = vst.msk [vmem:[%s3698_s6 + $0x410] sm:$0xff] %vm2313_vm3, %v2187_v41  ;;  %2314 = vst.msk [vmem:[%s3698_s6] sm:$0xff] %vm2313_vm3, %v2057_v42  ;;  %v2188_v49 = vmax.f32 %v1558_v43, 0.0  ;;  %v2058_v50 = vmax.f32 %v1038_v44, 0.0  ;;  %3181 = vmatmul.mubr.msk.bf16.gmra.mrb[108].mxu1 %vm608_vm2, %v591_v33  ;;  %3056 = vmatprep.mubr.msk.bf16.mxu0 %vm608_vm2, %v528_v34  ;;  %v465_v33 = vld [vmem:[%s3347_s28 + $0x7c8] sm:$0xff]  ;;  %v595_v42 = vpack.c.bf16 %v463_v28, %v462_v26 }
  0xf3   : > { %2442 = vst.msk [vmem:[%s3698_s6 + $0x400] sm:$0xff] %vm2313_vm3, %v2185_v46  ;;  %2317 = vst.msk [vmem:[%s3698_s6 + $0x18] sm:$0xff] %vm2313_vm3, %v2060_v47  ;;  %v2186_v54 = vmax.f32 %v1550_v48, 0.0  ;;  %3184 = vmatprep.mubr.msk.bf16.mxu1 %vm608_vm2, %v592_v40  ;;  %v532_v43 = vpack.c.bf16 %v337_v30, %v336_v29 }
  0xf4   : > { %2445 = vst.msk [vmem:[%s3698_s6 + $0x418] sm:$0xff] %vm2313_vm3, %v2188_v49  ;;  %2315 = vst.msk [vmem:[%s3698_s6 + $0x8] sm:$0xff] %vm2313_vm3, %v2058_v50  ;;  %v2950_v58 = vpop.f32.mrb[4].mxu0  ;;  %v596_v49 = vpack.c.bf16 %v465_v33, %v464_v32  ;;  %v342_v33 = vld [vmem:[%s3347_s28 + $0x3f0] sm:$0xff] }
  0xf5   : > { %2443 = vst.msk [vmem:[%s3698_s6 + $0x408] sm:$0xff] %vm2313_vm3, %v2186_v54  ;;  %v1059_v61 = vadd.f32 %v2950_v58, %v3679_v15  ;;  %v3078_v62 = vpop.f32.mrb[4].mxu1  ;;  %v1050_v63 = vpop.f32.mrb[5].mxu0 }
  0xf6   : > { %v1571_v1 = vadd.f32 %v3078_v62, %v3679_v15  ;;  %v1051_v2 = vadd.f32 %v3679_v15, %v1050_v63  ;;  %v1562_v3 = vpop.f32.mrb[5].mxu1  ;;  %v2951_v4 = vpop.f32.mrb[6].mxu0  ;;  %v466_v62 = vld [vmem:[%s3347_s28 + $0x7d0] sm:$0xff] }
  0xf7   : > { %v2063_v7 = vmax.f32 %v1059_v61, 0.0  ;;  %v1563_v8 = vadd.f32 %v3679_v15, %v1562_v3  ;;  %v1062_v9 = vadd.f32 %v2951_v4, %v3679_v15  ;;  %v3079_v10 = vpop.f32.mrb[6].mxu1  ;;  %v1053_v11 = vpop.f32.mrb[7].mxu0  ;;  %v339_v61 = vld [vmem:[%s3347_s28 + $0x3d8] sm:$0xff]  ;;  %v468_v4 = vld [vmem:[%s3347_s28 + $0x7e0] sm:$0xff] }
  0xf8   : > { %v2191_v13 = vmax.f32 %v1571_v1, 0.0  ;;  %v2061_v14 = vmax.f32 %v1051_v2, 0.0  ;;  %v1574_v16 = vadd.f32 %v3079_v10, %v3679_v15  ;;  %v1054_v17 = vadd.f32 %v3679_v15, %v1053_v11  ;;  %v1565_v18 = vpop.f32.mrb[7].mxu1  ;;  %v340_v1 = vld [vmem:[%s3347_s28 + $0x3e0] sm:$0xff]  ;;  %v341_v2 = vld [vmem:[%s3347_s28 + $0x3e8] sm:$0xff] }
  0xf9   : > { %2320 = vst.msk [vmem:[%s3698_s6 + $0x30] sm:$0xff] %vm2313_vm3, %v2063_v7  ;;  %v2189_v19 = vmax.f32 %v1563_v8, 0.0  ;;  %v2064_v20 = vmax.f32 %v1062_v9, 0.0  ;;  %v1566_v21 = vadd.f32 %v3679_v15, %v1565_v18  ;;  %3057 = vmatmul.mubr.msk.bf16.gmra.mrb[112].mxu0 %vm608_vm2, %v529_v0  ;;  %v467_v0 = vld [vmem:[%s3347_s28 + $0x7d8] sm:$0xff]  ;;  %v533_v9 = vpack.c.bf16 %v339_v61, %v338_v60 }
  0xfa   : > { %2448 = vst.msk [vmem:[%s3698_s6 + $0x430] sm:$0xff] %vm2313_vm3, %v2191_v13  ;;  %2318 = vst.msk [vmem:[%s3698_s6 + $0x20] sm:$0xff] %vm2313_vm3, %v2061_v14  ;;  %v2192_v22 = vmax.f32 %v1574_v16, 0.0  ;;  %v2062_v23 = vmax.f32 %v1054_v17, 0.0  ;;  %3185 = vmatmul.mubr.msk.bf16.gmra.mrb[112].mxu1 %vm608_vm2, %v593_v5  ;;  %3060 = vmatprep.mubr.msk.bf16.mxu0 %vm608_vm2, %v530_v6  ;;  %v469_v5 = vld [vmem:[%s3347_s28 + $0x7e8] sm:$0xff]  ;;  %v597_v14 = vpack.c.bf16 %v467_v0, %v466_v62 }
  0xfb   : > { %2446 = vst.msk [vmem:[%s3698_s6 + $0x420] sm:$0xff] %vm2313_vm3, %v2189_v19  ;;  %2321 = vst.msk [vmem:[%s3698_s6 + $0x38] sm:$0xff] %vm2313_vm3, %v2064_v20  ;;  %v2190_v27 = vmax.f32 %v1566_v21, 0.0  ;;  %3188 = vmatprep.mubr.msk.bf16.mxu1 %vm608_vm2, %v594_v12  ;;  %v534_v16 = vpack.c.bf16 %v341_v2, %v340_v1 }
  0xfc   : > { %2449 = vst.msk [vmem:[%s3698_s6 + $0x438] sm:$0xff] %vm2313_vm3, %v2192_v22  ;;  %2319 = vst.msk [vmem:[%s3698_s6 + $0x28] sm:$0xff] %vm2313_vm3, %v2062_v23  ;;  %v2954_v31 = vpop.f32.mrb[8].mxu0  ;;  %v598_v22 = vpack.c.bf16 %v469_v5, %v468_v4 }
  0xfd   : > { %2447 = vst.msk [vmem:[%s3698_s6 + $0x428] sm:$0xff] %vm2313_vm3, %v2190_v27  ;;  %v1075_v34 = vadd.f32 %v2954_v31, %v3679_v15  ;;  %v3082_v35 = vpop.f32.mrb[8].mxu1  ;;  %v1066_v36 = vpop.f32.mrb[9].mxu0 }
  0xfe   : > { %v1587_v38 = vadd.f32 %v3082_v35, %v3679_v15  ;;  %v1067_v39 = vadd.f32 %v3679_v15, %v1066_v36  ;;  %v1578_v40 = vpop.f32.mrb[9].mxu1  ;;  %v2955_v41 = vpop.f32.mrb[10].mxu0  ;;  %v470_v36 = vld [vmem:[%s3347_s28 + $0x7f0] sm:$0xff] }
  0xff   : > { %v2067_v44 = vmax.f32 %v1075_v34, 0.0  ;;  %v1579_v45 = vadd.f32 %v3679_v15, %v1578_v40  ;;  %v1078_v46 = vadd.f32 %v2955_v41, %v3679_v15  ;;  %v3083_v47 = vpop.f32.mrb[10].mxu1  ;;  %v1069_v48 = vpop.f32.mrb[11].mxu0  ;;  %v343_v34 = vld [vmem:[%s3347_s28 + $0x3f8] sm:$0xff] }
 0x100   : > { %v2195_v50 = vmax.f32 %v1587_v38, 0.0  ;;  %v2065_v51 = vmax.f32 %v1067_v39, 0.0  ;;  %v1590_v52 = vadd.f32 %v3083_v47, %v3679_v15  ;;  %v1070_v53 = vadd.f32 %v3679_v15, %v1069_v48  ;;  %v1581_v54 = vpop.f32.mrb[11].mxu1 }
 0x101   : > { %2324 = vst.msk [vmem:[%s3698_s6 + $0x50] sm:$0xff] %vm2313_vm3, %v2067_v44  ;;  %v2193_v55 = vmax.f32 %v1579_v45, 0.0  ;;  %v2068_v56 = vmax.f32 %v1078_v46, 0.0  ;;  %v1582_v57 = vadd.f32 %v3679_v15, %v1581_v54  ;;  %3061 = vmatmul.mubr.msk.bf16.gmra.mrb[116].mxu0 %vm608_vm2, %v531_v37  ;;  %v471_v37 = vld [vmem:[%s3347_s28 + $0x7f8] sm:$0xff] }
 0x102   : > { %2452 = vst.msk [vmem:[%s3698_s6 + $0x450] sm:$0xff] %vm2313_vm3, %v2195_v50  ;;  %2322 = vst.msk [vmem:[%s3698_s6 + $0x40] sm:$0xff] %vm2313_vm3, %v2065_v51  ;;  %v2196_v58 = vmax.f32 %v1590_v52, 0.0  ;;  %v2066_v59 = vmax.f32 %v1070_v53, 0.0  ;;  %3189 = vmatmul.mubr.msk.bf16.gmra.mrb[116].mxu1 %vm608_vm2, %v595_v42  ;;  %3064 = vmatprep.mubr.msk.bf16.mxu0 %vm608_vm2, %v532_v43  ;;  %v535_v42 = vpack.c.bf16 %v343_v34, %v342_v33 }
 0x103   : > { %2450 = vst.msk [vmem:[%s3698_s6 + $0x440] sm:$0xff] %vm2313_vm3, %v2193_v55  ;;  %2325 = vst.msk [vmem:[%s3698_s6 + $0x58] sm:$0xff] %vm2313_vm3, %v2068_v56  ;;  %v2194_v63 = vmax.f32 %v1582_v57, 0.0  ;;  %3192 = vmatprep.mubr.msk.bf16.mxu1 %vm608_vm2, %v596_v49  ;;  %v599_v47 = vpack.c.bf16 %v471_v37, %v470_v36 }
 0x104   : > { %2453 = vst.msk [vmem:[%s3698_s6 + $0x458] sm:$0xff] %vm2313_vm3, %v2196_v58  ;;  %2323 = vst.msk [vmem:[%s3698_s6 + $0x48] sm:$0xff] %vm2313_vm3, %v2066_v59  ;;  %v2958_v3 = vpop.f32.mrb[12].mxu0 }
 0x105   : > { %2451 = vst.msk [vmem:[%s3698_s6 + $0x448] sm:$0xff] %vm2313_vm3, %v2194_v63  ;;  %v1091_v6 = vadd.f32 %v2958_v3, %v3679_v15  ;;  %v3086_v7 = vpop.f32.mrb[12].mxu1  ;;  %v1082_v8 = vpop.f32.mrb[13].mxu0 }
 0x106   : > { %v1603_v10 = vadd.f32 %v3086_v7, %v3679_v15  ;;  %v1083_v11 = vadd.f32 %v3679_v15, %v1082_v8  ;;  %v1594_v12 = vpop.f32.mrb[13].mxu1  ;;  %v2959_v13 = vpop.f32.mrb[14].mxu0 }
 0x107   : > { %v2071_v17 = vmax.f32 %v1091_v6, 0.0  ;;  %v1595_v18 = vadd.f32 %v3679_v15, %v1594_v12  ;;  %v1094_v19 = vadd.f32 %v2959_v13, %v3679_v15  ;;  %v3087_v20 = vpop.f32.mrb[14].mxu1  ;;  %v1085_v21 = vpop.f32.mrb[15].mxu0 }
 0x108   : > { %v2199_v23 = vmax.f32 %v1603_v10, 0.0  ;;  %v2069_v24 = vmax.f32 %v1083_v11, 0.0  ;;  %v1606_v25 = vadd.f32 %v3087_v20, %v3679_v15  ;;  %v1086_v26 = vadd.f32 %v3679_v15, %v1085_v21  ;;  %v1597_v27 = vpop.f32.mrb[15].mxu1 }
 0x109   : > { %2328 = vst.msk [vmem:[%s3698_s6 + $0x70] sm:$0xff] %vm2313_vm3, %v2071_v17  ;;  %v2197_v28 = vmax.f32 %v1595_v18, 0.0  ;;  %v2072_v29 = vmax.f32 %v1094_v19, 0.0  ;;  %v1598_v30 = vadd.f32 %v3679_v15, %v1597_v27  ;;  %3065 = vmatmul.mubr.msk.bf16.gmra.mrb[120].mxu0 %vm608_vm2, %v533_v9 }
 0x10a   : > { %2456 = vst.msk [vmem:[%s3698_s6 + $0x470] sm:$0xff] %vm2313_vm3, %v2199_v23  ;;  %2326 = vst.msk [vmem:[%s3698_s6 + $0x60] sm:$0xff] %vm2313_vm3, %v2069_v24  ;;  %v2200_v31 = vmax.f32 %v1606_v25, 0.0  ;;  %v2070_v32 = vmax.f32 %v1086_v26, 0.0  ;;  %3193 = vmatmul.mubr.msk.bf16.gmra.mrb[120].mxu1 %vm608_vm2, %v597_v14  ;;  %3068 = vmatprep.mubr.msk.bf16.mxu0 %vm608_vm2, %v534_v16 }
 0x10b   : > { %2454 = vst.msk [vmem:[%s3698_s6 + $0x460] sm:$0xff] %vm2313_vm3, %v2197_v28  ;;  %2329 = vst.msk [vmem:[%s3698_s6 + $0x78] sm:$0xff] %vm2313_vm3, %v2072_v29  ;;  %v2198_v35 = vmax.f32 %v1598_v30, 0.0  ;;  %3196 = vmatprep.mubr.msk.bf16.mxu1 %vm608_vm2, %v598_v22 }
 0x10c   : > { %2457 = vst.msk [vmem:[%s3698_s6 + $0x478] sm:$0xff] %vm2313_vm3, %v2200_v31  ;;  %2327 = vst.msk [vmem:[%s3698_s6 + $0x68] sm:$0xff] %vm2313_vm3, %v2070_v32  ;;  %v2962_v38 = vpop.f32.mrb[16].mxu0 }
 0x10d   : > { %2455 = vst.msk [vmem:[%s3698_s6 + $0x468] sm:$0xff] %vm2313_vm3, %v2198_v35  ;;  %v1107_v39 = vadd.f32 %v2962_v38, %v3679_v15  ;;  %v3090_v40 = vpop.f32.mrb[16].mxu1  ;;  %v1098_v41 = vpop.f32.mrb[17].mxu0 }
 0x10e   : > { %v1619_v43 = vadd.f32 %v3090_v40, %v3679_v15  ;;  %v1099_v44 = vadd.f32 %v3679_v15, %v1098_v41  ;;  %v1610_v45 = vpop.f32.mrb[17].mxu1  ;;  %v2963_v46 = vpop.f32.mrb[18].mxu0 }
 0x10f   : > { %v2075_v48 = vmax.f32 %v1107_v39, 0.0  ;;  %v1611_v49 = vadd.f32 %v3679_v15, %v1610_v45  ;;  %v1110_v50 = vadd.f32 %v2963_v46, %v3679_v15  ;;  %v3091_v51 = vpop.f32.mrb[18].mxu1  ;;  %v1101_v52 = vpop.f32.mrb[19].mxu0 }
 0x110   : > { %v2203_v53 = vmax.f32 %v1619_v43, 0.0  ;;  %v2073_v54 = vmax.f32 %v1099_v44, 0.0  ;;  %v1622_v55 = vadd.f32 %v3091_v51, %v3679_v15  ;;  %v1102_v56 = vadd.f32 %v3679_v15, %v1101_v52  ;;  %v1613_v57 = vpop.f32.mrb[19].mxu1 }
 0x111   : > { %2332 = vst.msk [vmem:[%s3698_s6 + $0x90] sm:$0xff] %vm2313_vm3, %v2075_v48  ;;  %v2201_v58 = vmax.f32 %v1611_v49, 0.0  ;;  %v2076_v59 = vmax.f32 %v1110_v50, 0.0  ;;  %v1614_v60 = vadd.f32 %v3679_v15, %v1613_v57  ;;  %3069 = vmatmul.mubr.msk.bf16.gmra.mrb[124].mxu0 %vm608_vm2, %v535_v42 }
 0x112   : > { %2460 = vst.msk [vmem:[%s3698_s6 + $0x490] sm:$0xff] %vm2313_vm3, %v2203_v53  ;;  %2330 = vst.msk [vmem:[%s3698_s6 + $0x80] sm:$0xff] %vm2313_vm3, %v2073_v54  ;;  %v2204_v61 = vmax.f32 %v1622_v55, 0.0  ;;  %v2074_v62 = vmax.f32 %v1102_v56, 0.0  ;;  %3197 = vmatmul.mubr.msk.bf16.gmra.mrb[124].mxu1 %vm608_vm2, %v599_v47 }
 0x113   : > { %2458 = vst.msk [vmem:[%s3698_s6 + $0x480] sm:$0xff] %vm2313_vm3, %v2201_v58  ;;  %2333 = vst.msk [vmem:[%s3698_s6 + $0x98] sm:$0xff] %vm2313_vm3, %v2076_v59  ;;  %v2202_v63 = vmax.f32 %v1614_v60, 0.0 }
 0x114   : > { %2461 = vst.msk [vmem:[%s3698_s6 + $0x498] sm:$0xff] %vm2313_vm3, %v2204_v61  ;;  %2331 = vst.msk [vmem:[%s3698_s6 + $0x88] sm:$0xff] %vm2313_vm3, %v2074_v62  ;;  %v2966_v0 = vpop.f32.mrb[20].mxu0 }
 0x115   : > { %2459 = vst.msk [vmem:[%s3698_s6 + $0x488] sm:$0xff] %vm2313_vm3, %v2202_v63  ;;  %v1123_v1 = vadd.f32 %v2966_v0, %v3679_v15  ;;  %v3094_v2 = vpop.f32.mrb[20].mxu1  ;;  %v1114_v3 = vpop.f32.mrb[21].mxu0 }
 0x116   : > { %v1635_v4 = vadd.f32 %v3094_v2, %v3679_v15  ;;  %v1115_v5 = vadd.f32 %v3679_v15, %v1114_v3  ;;  %v1626_v6 = vpop.f32.mrb[21].mxu1  ;;  %v2967_v7 = vpop.f32.mrb[22].mxu0 }
 0x117   : > { %v2079_v8 = vmax.f32 %v1123_v1, 0.0  ;;  %v1627_v9 = vadd.f32 %v3679_v15, %v1626_v6  ;;  %v1126_v10 = vadd.f32 %v2967_v7, %v3679_v15  ;;  %v3095_v11 = vpop.f32.mrb[22].mxu1  ;;  %v1117_v12 = vpop.f32.mrb[23].mxu0 }
 0x118   : > { %v2207_v13 = vmax.f32 %v1635_v4, 0.0  ;;  %v2077_v14 = vmax.f32 %v1115_v5, 0.0  ;;  %v1638_v16 = vadd.f32 %v3095_v11, %v3679_v15  ;;  %v1118_v17 = vadd.f32 %v3679_v15, %v1117_v12  ;;  %v1629_v18 = vpop.f32.mrb[23].mxu1 }
 0x119   : > { %2336 = vst.msk [vmem:[%s3698_s6 + $0xb0] sm:$0xff] %vm2313_vm3, %v2079_v8  ;;  %v2205_v19 = vmax.f32 %v1627_v9, 0.0  ;;  %v2080_v20 = vmax.f32 %v1126_v10, 0.0  ;;  %v1630_v21 = vadd.f32 %v3679_v15, %v1629_v18 }
 0x11a   : > { %2464 = vst.msk [vmem:[%s3698_s6 + $0x4b0] sm:$0xff] %vm2313_vm3, %v2207_v13  ;;  %2334 = vst.msk [vmem:[%s3698_s6 + $0xa0] sm:$0xff] %vm2313_vm3, %v2077_v14  ;;  %v2208_v22 = vmax.f32 %v1638_v16, 0.0  ;;  %v2078_v23 = vmax.f32 %v1118_v17, 0.0 }
 0x11b   : > { %2462 = vst.msk [vmem:[%s3698_s6 + $0x4a0] sm:$0xff] %vm2313_vm3, %v2205_v19  ;;  %2337 = vst.msk [vmem:[%s3698_s6 + $0xb8] sm:$0xff] %vm2313_vm3, %v2080_v20  ;;  %v2206_v24 = vmax.f32 %v1630_v21, 0.0 }
 0x11c   : > { %2465 = vst.msk [vmem:[%s3698_s6 + $0x4b8] sm:$0xff] %vm2313_vm3, %v2208_v22  ;;  %2335 = vst.msk [vmem:[%s3698_s6 + $0xa8] sm:$0xff] %vm2313_vm3, %v2078_v23  ;;  %v2970_v25 = vpop.f32.mrb[24].mxu0 }
 0x11d   : > { %2463 = vst.msk [vmem:[%s3698_s6 + $0x4a8] sm:$0xff] %vm2313_vm3, %v2206_v24  ;;  %v1139_v26 = vadd.f32 %v2970_v25, %v3679_v15  ;;  %v3098_v27 = vpop.f32.mrb[24].mxu1  ;;  %v1130_v28 = vpop.f32.mrb[25].mxu0 }
 0x11e   : > { %v1651_v29 = vadd.f32 %v3098_v27, %v3679_v15  ;;  %v1131_v30 = vadd.f32 %v3679_v15, %v1130_v28  ;;  %v1642_v31 = vpop.f32.mrb[25].mxu1  ;;  %v2971_v32 = vpop.f32.mrb[26].mxu0 }
 0x11f   : > { %v2083_v33 = vmax.f32 %v1139_v26, 0.0  ;;  %v1643_v34 = vadd.f32 %v3679_v15, %v1642_v31  ;;  %v1142_v35 = vadd.f32 %v2971_v32, %v3679_v15  ;;  %v3099_v36 = vpop.f32.mrb[26].mxu1  ;;  %v1133_v37 = vpop.f32.mrb[27].mxu0 }
 0x120   : > { %v2211_v38 = vmax.f32 %v1651_v29, 0.0  ;;  %v2081_v39 = vmax.f32 %v1131_v30, 0.0  ;;  %v1654_v40 = vadd.f32 %v3099_v36, %v3679_v15  ;;  %v1134_v41 = vadd.f32 %v3679_v15, %v1133_v37  ;;  %v1645_v42 = vpop.f32.mrb[27].mxu1 }
 0x121   : > { %2340 = vst.msk [vmem:[%s3698_s6 + $0xd0] sm:$0xff] %vm2313_vm3, %v2083_v33  ;;  %v2209_v43 = vmax.f32 %v1643_v34, 0.0  ;;  %v2084_v44 = vmax.f32 %v1142_v35, 0.0  ;;  %v1646_v45 = vadd.f32 %v3679_v15, %v1645_v42 }
 0x122   : > { %2468 = vst.msk [vmem:[%s3698_s6 + $0x4d0] sm:$0xff] %vm2313_vm3, %v2211_v38  ;;  %2338 = vst.msk [vmem:[%s3698_s6 + $0xc0] sm:$0xff] %vm2313_vm3, %v2081_v39  ;;  %v2212_v46 = vmax.f32 %v1654_v40, 0.0  ;;  %v2082_v47 = vmax.f32 %v1134_v41, 0.0 }
 0x123   : > { %2466 = vst.msk [vmem:[%s3698_s6 + $0x4c0] sm:$0xff] %vm2313_vm3, %v2209_v43  ;;  %2341 = vst.msk [vmem:[%s3698_s6 + $0xd8] sm:$0xff] %vm2313_vm3, %v2084_v44  ;;  %v2210_v48 = vmax.f32 %v1646_v45, 0.0 }
 0x124   : > { %2469 = vst.msk [vmem:[%s3698_s6 + $0x4d8] sm:$0xff] %vm2313_vm3, %v2212_v46  ;;  %2339 = vst.msk [vmem:[%s3698_s6 + $0xc8] sm:$0xff] %vm2313_vm3, %v2082_v47  ;;  %v2974_v49 = vpop.f32.mrb[28].mxu0 }
 0x125   : > { %2467 = vst.msk [vmem:[%s3698_s6 + $0x4c8] sm:$0xff] %vm2313_vm3, %v2210_v48  ;;  %v1155_v50 = vadd.f32 %v2974_v49, %v3679_v15  ;;  %v3102_v51 = vpop.f32.mrb[28].mxu1  ;;  %v1146_v52 = vpop.f32.mrb[29].mxu0 }
 0x126   : > { %v1667_v53 = vadd.f32 %v3102_v51, %v3679_v15  ;;  %v1147_v54 = vadd.f32 %v3679_v15, %v1146_v52  ;;  %v1658_v55 = vpop.f32.mrb[29].mxu1  ;;  %v2975_v56 = vpop.f32.mrb[30].mxu0 }
 0x127   : > { %v2087_v57 = vmax.f32 %v1155_v50, 0.0  ;;  %v1659_v58 = vadd.f32 %v3679_v15, %v1658_v55  ;;  %v1158_v59 = vadd.f32 %v2975_v56, %v3679_v15  ;;  %v3103_v60 = vpop.f32.mrb[30].mxu1  ;;  %v1149_v61 = vpop.f32.mrb[31].mxu0 }
 0x128   : > { %v2215_v62 = vmax.f32 %v1667_v53, 0.0  ;;  %v2085_v63 = vmax.f32 %v1147_v54, 0.0  ;;  %v1670_v0 = vadd.f32 %v3103_v60, %v3679_v15  ;;  %v1150_v1 = vadd.f32 %v3679_v15, %v1149_v61  ;;  %v1661_v2 = vpop.f32.mrb[31].mxu1 }
 0x129   : > { %2344 = vst.msk [vmem:[%s3698_s6 + $0xf0] sm:$0xff] %vm2313_vm3, %v2087_v57  ;;  %v2213_v3 = vmax.f32 %v1659_v58, 0.0  ;;  %v2088_v4 = vmax.f32 %v1158_v59, 0.0  ;;  %v1662_v5 = vadd.f32 %v3679_v15, %v1661_v2 }
 0x12a   : > { %2472 = vst.msk [vmem:[%s3698_s6 + $0x4f0] sm:$0xff] %vm2313_vm3, %v2215_v62  ;;  %2342 = vst.msk [vmem:[%s3698_s6 + $0xe0] sm:$0xff] %vm2313_vm3, %v2085_v63  ;;  %v2216_v6 = vmax.f32 %v1670_v0, 0.0  ;;  %v2086_v7 = vmax.f32 %v1150_v1, 0.0 }
 0x12b   : > { %2470 = vst.msk [vmem:[%s3698_s6 + $0x4e0] sm:$0xff] %vm2313_vm3, %v2213_v3  ;;  %2345 = vst.msk [vmem:[%s3698_s6 + $0xf8] sm:$0xff] %vm2313_vm3, %v2088_v4  ;;  %v2214_v8 = vmax.f32 %v1662_v5, 0.0 }
 0x12c   : > { %2473 = vst.msk [vmem:[%s3698_s6 + $0x4f8] sm:$0xff] %vm2313_vm3, %v2216_v6  ;;  %2343 = vst.msk [vmem:[%s3698_s6 + $0xe8] sm:$0xff] %vm2313_vm3, %v2086_v7  ;;  %v2978_v9 = vpop.f32.mrb[32].mxu0 }
 0x12d   : > { %2471 = vst.msk [vmem:[%s3698_s6 + $0x4e8] sm:$0xff] %vm2313_vm3, %v2214_v8  ;;  %v1171_v10 = vadd.f32 %v2978_v9, %v3679_v15  ;;  %v3106_v11 = vpop.f32.mrb[32].mxu1  ;;  %v1162_v12 = vpop.f32.mrb[33].mxu0 }
 0x12e   : > { %v1683_v13 = vadd.f32 %v3106_v11, %v3679_v15  ;;  %v1163_v14 = vadd.f32 %v3679_v15, %v1162_v12  ;;  %v1674_v16 = vpop.f32.mrb[33].mxu1  ;;  %v2979_v17 = vpop.f32.mrb[34].mxu0 }
 0x12f   : > { %v2091_v18 = vmax.f32 %v1171_v10, 0.0  ;;  %v1675_v19 = vadd.f32 %v3679_v15, %v1674_v16  ;;  %v1174_v20 = vadd.f32 %v2979_v17, %v3679_v15  ;;  %v3107_v21 = vpop.f32.mrb[34].mxu1  ;;  %v1165_v22 = vpop.f32.mrb[35].mxu0 }
 0x130   : > { %v2219_v23 = vmax.f32 %v1683_v13, 0.0  ;;  %v2089_v24 = vmax.f32 %v1163_v14, 0.0  ;;  %v1686_v25 = vadd.f32 %v3107_v21, %v3679_v15  ;;  %v1166_v26 = vadd.f32 %v3679_v15, %v1165_v22  ;;  %v1677_v27 = vpop.f32.mrb[35].mxu1 }
 0x131   : > { %2348 = vst.msk [vmem:[%s3698_s6 + $0x110] sm:$0xff] %vm2313_vm3, %v2091_v18  ;;  %v2217_v28 = vmax.f32 %v1675_v19, 0.0  ;;  %v2092_v29 = vmax.f32 %v1174_v20, 0.0  ;;  %v1678_v30 = vadd.f32 %v3679_v15, %v1677_v27 }
 0x132   : > { %2476 = vst.msk [vmem:[%s3698_s6 + $0x510] sm:$0xff] %vm2313_vm3, %v2219_v23  ;;  %2346 = vst.msk [vmem:[%s3698_s6 + $0x100] sm:$0xff] %vm2313_vm3, %v2089_v24  ;;  %v2220_v31 = vmax.f32 %v1686_v25, 0.0  ;;  %v2090_v32 = vmax.f32 %v1166_v26, 0.0 }
 0x133   : > { %2474 = vst.msk [vmem:[%s3698_s6 + $0x500] sm:$0xff] %vm2313_vm3, %v2217_v28  ;;  %2349 = vst.msk [vmem:[%s3698_s6 + $0x118] sm:$0xff] %vm2313_vm3, %v2092_v29  ;;  %v2218_v33 = vmax.f32 %v1678_v30, 0.0 }
 0x134   : > { %2477 = vst.msk [vmem:[%s3698_s6 + $0x518] sm:$0xff] %vm2313_vm3, %v2220_v31  ;;  %2347 = vst.msk [vmem:[%s3698_s6 + $0x108] sm:$0xff] %vm2313_vm3, %v2090_v32  ;;  %v2982_v34 = vpop.f32.mrb[36].mxu0 }
 0x135   : > { %2475 = vst.msk [vmem:[%s3698_s6 + $0x508] sm:$0xff] %vm2313_vm3, %v2218_v33  ;;  %v1187_v35 = vadd.f32 %v2982_v34, %v3679_v15  ;;  %v3110_v36 = vpop.f32.mrb[36].mxu1  ;;  %v1178_v37 = vpop.f32.mrb[37].mxu0 }
 0x136   : > { %v1699_v38 = vadd.f32 %v3110_v36, %v3679_v15  ;;  %v1179_v39 = vadd.f32 %v3679_v15, %v1178_v37  ;;  %v1690_v40 = vpop.f32.mrb[37].mxu1  ;;  %v2983_v41 = vpop.f32.mrb[38].mxu0 }
 0x137   : > { %v2095_v42 = vmax.f32 %v1187_v35, 0.0  ;;  %v1691_v43 = vadd.f32 %v3679_v15, %v1690_v40  ;;  %v1190_v44 = vadd.f32 %v2983_v41, %v3679_v15  ;;  %v3111_v45 = vpop.f32.mrb[38].mxu1  ;;  %v1181_v46 = vpop.f32.mrb[39].mxu0 }
 0x138   : > { %v2223_v47 = vmax.f32 %v1699_v38, 0.0  ;;  %v2093_v48 = vmax.f32 %v1179_v39, 0.0  ;;  %v1702_v49 = vadd.f32 %v3111_v45, %v3679_v15  ;;  %v1182_v50 = vadd.f32 %v3679_v15, %v1181_v46  ;;  %v1693_v51 = vpop.f32.mrb[39].mxu1 }
 0x139   : > { %2352 = vst.msk [vmem:[%s3698_s6 + $0x130] sm:$0xff] %vm2313_vm3, %v2095_v42  ;;  %v2221_v52 = vmax.f32 %v1691_v43, 0.0  ;;  %v2096_v53 = vmax.f32 %v1190_v44, 0.0  ;;  %v1694_v54 = vadd.f32 %v3679_v15, %v1693_v51 }
 0x13a   : > { %2480 = vst.msk [vmem:[%s3698_s6 + $0x530] sm:$0xff] %vm2313_vm3, %v2223_v47  ;;  %2350 = vst.msk [vmem:[%s3698_s6 + $0x120] sm:$0xff] %vm2313_vm3, %v2093_v48  ;;  %v2224_v55 = vmax.f32 %v1702_v49, 0.0  ;;  %v2094_v56 = vmax.f32 %v1182_v50, 0.0 }
 0x13b   : > { %2478 = vst.msk [vmem:[%s3698_s6 + $0x520] sm:$0xff] %vm2313_vm3, %v2221_v52  ;;  %2353 = vst.msk [vmem:[%s3698_s6 + $0x138] sm:$0xff] %vm2313_vm3, %v2096_v53  ;;  %v2222_v57 = vmax.f32 %v1694_v54, 0.0 }
 0x13c   : > { %2481 = vst.msk [vmem:[%s3698_s6 + $0x538] sm:$0xff] %vm2313_vm3, %v2224_v55  ;;  %2351 = vst.msk [vmem:[%s3698_s6 + $0x128] sm:$0xff] %vm2313_vm3, %v2094_v56  ;;  %v2986_v58 = vpop.f32.mrb[40].mxu0 }
 0x13d   : > { %2479 = vst.msk [vmem:[%s3698_s6 + $0x528] sm:$0xff] %vm2313_vm3, %v2222_v57  ;;  %v1203_v59 = vadd.f32 %v2986_v58, %v3679_v15  ;;  %v3114_v60 = vpop.f32.mrb[40].mxu1  ;;  %v1194_v61 = vpop.f32.mrb[41].mxu0 }
 0x13e   : > { %v1715_v62 = vadd.f32 %v3114_v60, %v3679_v15  ;;  %v1195_v63 = vadd.f32 %v3679_v15, %v1194_v61  ;;  %v1706_v0 = vpop.f32.mrb[41].mxu1  ;;  %v2987_v1 = vpop.f32.mrb[42].mxu0 }
 0x13f   : > { %v2099_v2 = vmax.f32 %v1203_v59, 0.0  ;;  %v1707_v3 = vadd.f32 %v3679_v15, %v1706_v0  ;;  %v1206_v4 = vadd.f32 %v2987_v1, %v3679_v15  ;;  %v3115_v5 = vpop.f32.mrb[42].mxu1  ;;  %v1197_v6 = vpop.f32.mrb[43].mxu0 }
 0x140   : > { %v2227_v7 = vmax.f32 %v1715_v62, 0.0  ;;  %v2097_v8 = vmax.f32 %v1195_v63, 0.0  ;;  %v1718_v9 = vadd.f32 %v3115_v5, %v3679_v15  ;;  %v1198_v10 = vadd.f32 %v3679_v15, %v1197_v6  ;;  %v1709_v11 = vpop.f32.mrb[43].mxu1 }
 0x141   : > { %2356 = vst.msk [vmem:[%s3698_s6 + $0x150] sm:$0xff] %vm2313_vm3, %v2099_v2  ;;  %v2225_v12 = vmax.f32 %v1707_v3, 0.0  ;;  %v2100_v13 = vmax.f32 %v1206_v4, 0.0  ;;  %v1710_v14 = vadd.f32 %v3679_v15, %v1709_v11 }
 0x142   : > { %2484 = vst.msk [vmem:[%s3698_s6 + $0x550] sm:$0xff] %vm2313_vm3, %v2227_v7  ;;  %2354 = vst.msk [vmem:[%s3698_s6 + $0x140] sm:$0xff] %vm2313_vm3, %v2097_v8  ;;  %v2228_v16 = vmax.f32 %v1718_v9, 0.0  ;;  %v2098_v17 = vmax.f32 %v1198_v10, 0.0 }
 0x143   : > { %2482 = vst.msk [vmem:[%s3698_s6 + $0x540] sm:$0xff] %vm2313_vm3, %v2225_v12  ;;  %2357 = vst.msk [vmem:[%s3698_s6 + $0x158] sm:$0xff] %vm2313_vm3, %v2100_v13  ;;  %v2226_v18 = vmax.f32 %v1710_v14, 0.0 }
 0x144   : > { %2485 = vst.msk [vmem:[%s3698_s6 + $0x558] sm:$0xff] %vm2313_vm3, %v2228_v16  ;;  %2355 = vst.msk [vmem:[%s3698_s6 + $0x148] sm:$0xff] %vm2313_vm3, %v2098_v17  ;;  %v2990_v19 = vpop.f32.mrb[44].mxu0 }
 0x145   : > { %2483 = vst.msk [vmem:[%s3698_s6 + $0x548] sm:$0xff] %vm2313_vm3, %v2226_v18  ;;  %v1219_v20 = vadd.f32 %v2990_v19, %v3679_v15  ;;  %v3118_v21 = vpop.f32.mrb[44].mxu1  ;;  %v1210_v22 = vpop.f32.mrb[45].mxu0 }
 0x146   : > { %v1731_v23 = vadd.f32 %v3118_v21, %v3679_v15  ;;  %v1211_v24 = vadd.f32 %v3679_v15, %v1210_v22  ;;  %v1722_v25 = vpop.f32.mrb[45].mxu1  ;;  %v2991_v26 = vpop.f32.mrb[46].mxu0 }
 0x147   : > { %v2103_v27 = vmax.f32 %v1219_v20, 0.0  ;;  %v1723_v28 = vadd.f32 %v3679_v15, %v1722_v25  ;;  %v1222_v29 = vadd.f32 %v2991_v26, %v3679_v15  ;;  %v3119_v30 = vpop.f32.mrb[46].mxu1  ;;  %v1213_v31 = vpop.f32.mrb[47].mxu0 }
 0x148   : > { %v2231_v32 = vmax.f32 %v1731_v23, 0.0  ;;  %v2101_v33 = vmax.f32 %v1211_v24, 0.0  ;;  %v1734_v34 = vadd.f32 %v3119_v30, %v3679_v15  ;;  %v1214_v35 = vadd.f32 %v3679_v15, %v1213_v31  ;;  %v1725_v36 = vpop.f32.mrb[47].mxu1  ;;  %v4069_v24 = vld [vmem:[%s4540_s2] ss:$0 sm:$0xff] }
 0x149   : > { %2360 = vst.msk [vmem:[%s3698_s6 + $0x170] sm:$0xff] %vm2313_vm3, %v2103_v27  ;;  %v2229_v37 = vmax.f32 %v1723_v28, 0.0  ;;  %v2104_v38 = vmax.f32 %v1222_v29, 0.0  ;;  %v1726_v39 = vadd.f32 %v3679_v15, %v1725_v36 }
 0x14a   : > { %2488 = vst.msk [vmem:[%s3698_s6 + $0x570] sm:$0xff] %vm2313_vm3, %v2231_v32  ;;  %2358 = vst.msk [vmem:[%s3698_s6 + $0x160] sm:$0xff] %vm2313_vm3, %v2101_v33  ;;  %v2232_v40 = vmax.f32 %v1734_v34, 0.0  ;;  %v2102_v41 = vmax.f32 %v1214_v35, 0.0 }
 0x14b   : > { %2486 = vst.msk [vmem:[%s3698_s6 + $0x560] sm:$0xff] %vm2313_vm3, %v2229_v37  ;;  %2361 = vst.msk [vmem:[%s3698_s6 + $0x178] sm:$0xff] %vm2313_vm3, %v2104_v38  ;;  %v2230_v42 = vmax.f32 %v1726_v39, 0.0 }
 0x14c   : > { %2489 = vst.msk [vmem:[%s3698_s6 + $0x578] sm:$0xff] %vm2313_vm3, %v2232_v40  ;;  %2359 = vst.msk [vmem:[%s3698_s6 + $0x168] sm:$0xff] %vm2313_vm3, %v2102_v41  ;;  %v2994_v43 = vpop.f32.mrb[48].mxu0 }
 0x14d   : > { %2487 = vst.msk [vmem:[%s3698_s6 + $0x568] sm:$0xff] %vm2313_vm3, %v2230_v42  ;;  %v1235_v44 = vadd.f32 %v2994_v43, %v3679_v15  ;;  %v3122_v45 = vpop.f32.mrb[48].mxu1  ;;  %v1226_v46 = vpop.f32.mrb[49].mxu0 }
 0x14e   : > { %v1747_v47 = vadd.f32 %v3122_v45, %v3679_v15  ;;  %v1227_v48 = vadd.f32 %v3679_v15, %v1226_v46  ;;  %v1738_v49 = vpop.f32.mrb[49].mxu1  ;;  %v2995_v50 = vpop.f32.mrb[50].mxu0 }
 0x14f   : > { %v2107_v51 = vmax.f32 %v1235_v44, 0.0  ;;  %v1739_v52 = vadd.f32 %v3679_v15, %v1738_v49  ;;  %v1238_v53 = vadd.f32 %v2995_v50, %v3679_v15  ;;  %v3123_v54 = vpop.f32.mrb[50].mxu1  ;;  %v1229_v55 = vpop.f32.mrb[51].mxu0 }
 0x150   : > { %v2235_v56 = vmax.f32 %v1747_v47, 0.0  ;;  %v2105_v57 = vmax.f32 %v1227_v48, 0.0  ;;  %v1750_v58 = vadd.f32 %v3123_v54, %v3679_v15  ;;  %v1230_v59 = vadd.f32 %v3679_v15, %v1229_v55  ;;  %v1741_v60 = vpop.f32.mrb[51].mxu1 }
 0x151   : > { %2364 = vst.msk [vmem:[%s3698_s6 + $0x190] sm:$0xff] %vm2313_vm3, %v2107_v51  ;;  %v2233_v61 = vmax.f32 %v1739_v52, 0.0  ;;  %v2108_v62 = vmax.f32 %v1238_v53, 0.0  ;;  %v1742_v63 = vadd.f32 %v3679_v15, %v1741_v60 }
 0x152   : > { %2492 = vst.msk [vmem:[%s3698_s6 + $0x590] sm:$0xff] %vm2313_vm3, %v2235_v56  ;;  %2362 = vst.msk [vmem:[%s3698_s6 + $0x180] sm:$0xff] %vm2313_vm3, %v2105_v57  ;;  %v2236_v0 = vmax.f32 %v1750_v58, 0.0  ;;  %v2106_v1 = vmax.f32 %v1230_v59, 0.0 }
 0x153   : > { %2490 = vst.msk [vmem:[%s3698_s6 + $0x580] sm:$0xff] %vm2313_vm3, %v2233_v61  ;;  %2365 = vst.msk [vmem:[%s3698_s6 + $0x198] sm:$0xff] %vm2313_vm3, %v2108_v62  ;;  %v2234_v2 = vmax.f32 %v1742_v63, 0.0 }
 0x154   : > { %2493 = vst.msk [vmem:[%s3698_s6 + $0x598] sm:$0xff] %vm2313_vm3, %v2236_v0  ;;  %2363 = vst.msk [vmem:[%s3698_s6 + $0x188] sm:$0xff] %vm2313_vm3, %v2106_v1  ;;  %v2998_v3 = vpop.f32.mrb[52].mxu0 }
 0x155   : > { %2491 = vst.msk [vmem:[%s3698_s6 + $0x588] sm:$0xff] %vm2313_vm3, %v2234_v2  ;;  %v1251_v4 = vadd.f32 %v2998_v3, %v3679_v15  ;;  %v3126_v5 = vpop.f32.mrb[52].mxu1  ;;  %v1242_v6 = vpop.f32.mrb[53].mxu0 }
 0x156   : > { %v1763_v7 = vadd.f32 %v3126_v5, %v3679_v15  ;;  %v1243_v8 = vadd.f32 %v3679_v15, %v1242_v6  ;;  %v1754_v9 = vpop.f32.mrb[53].mxu1  ;;  %v2999_v10 = vpop.f32.mrb[54].mxu0 }
 0x157   : > { %v2111_v11 = vmax.f32 %v1251_v4, 0.0  ;;  %v1755_v12 = vadd.f32 %v3679_v15, %v1754_v9  ;;  %v1254_v13 = vadd.f32 %v2999_v10, %v3679_v15  ;;  %v3127_v14 = vpop.f32.mrb[54].mxu1  ;;  %v1245_v16 = vpop.f32.mrb[55].mxu0 }
 0x158   : > { %v2239_v17 = vmax.f32 %v1763_v7, 0.0  ;;  %v2109_v18 = vmax.f32 %v1243_v8, 0.0  ;;  %v1766_v19 = vadd.f32 %v3127_v14, %v3679_v15  ;;  %v1246_v20 = vadd.f32 %v3679_v15, %v1245_v16  ;;  %v1757_v21 = vpop.f32.mrb[55].mxu1 }
 0x159   : > { %2368 = vst.msk [vmem:[%s3698_s6 + $0x1b0] sm:$0xff] %vm2313_vm3, %v2111_v11  ;;  %v2237_v22 = vmax.f32 %v1755_v12, 0.0  ;;  %v2112_v23 = vmax.f32 %v1254_v13, 0.0  ;;  %v1758_v25 = vadd.f32 %v4069_v24, %v1757_v21 }
 0x15a   : > { %2496 = vst.msk [vmem:[%s3698_s6 + $0x5b0] sm:$0xff] %vm2313_vm3, %v2239_v17  ;;  %2366 = vst.msk [vmem:[%s3698_s6 + $0x1a0] sm:$0xff] %vm2313_vm3, %v2109_v18  ;;  %v2240_v26 = vmax.f32 %v1766_v19, 0.0  ;;  %v2110_v27 = vmax.f32 %v1246_v20, 0.0 }
 0x15b   : > { %2494 = vst.msk [vmem:[%s3698_s6 + $0x5a0] sm:$0xff] %vm2313_vm3, %v2237_v22  ;;  %2369 = vst.msk [vmem:[%s3698_s6 + $0x1b8] sm:$0xff] %vm2313_vm3, %v2112_v23  ;;  %v2238_v15 = vmax.f32 %v1758_v25, 0.0 }
 0x15c   : > { %2497 = vst.msk [vmem:[%s3698_s6 + $0x5b8] sm:$0xff] %vm2313_vm3, %v2240_v26  ;;  %2367 = vst.msk [vmem:[%s3698_s6 + $0x1a8] sm:$0xff] %vm2313_vm3, %v2110_v27  ;;  %v3002_v28 = vpop.f32.mrb[56].mxu0 }
 0x15d   : > { %2495 = vst.msk [vmem:[%s3698_s6 + $0x5a8] sm:$0xff] %vm2313_vm3, %v2238_v15  ;;  %v1267_v29 = vadd.f32 %v4069_v24, %v3002_v28  ;;  %v3130_v30 = vpop.f32.mrb[56].mxu1  ;;  %v1258_v31 = vpop.f32.mrb[57].mxu0 }
 0x15e   : > { %v1779_v32 = vadd.f32 %v4069_v24, %v3130_v30  ;;  %v1259_v33 = vadd.f32 %v4069_v24, %v1258_v31  ;;  %v1770_v34 = vpop.f32.mrb[57].mxu1  ;;  %v3003_v35 = vpop.f32.mrb[58].mxu0 }
 0x15f   : > { %v2115_v36 = vmax.f32 %v1267_v29, 0.0  ;;  %v1771_v37 = vadd.f32 %v4069_v24, %v1770_v34  ;;  %v1270_v38 = vadd.f32 %v4069_v24, %v3003_v35  ;;  %v3131_v39 = vpop.f32.mrb[58].mxu1  ;;  %v1261_v40 = vpop.f32.mrb[59].mxu0 }
 0x160   : > { %v2243_v41 = vmax.f32 %v1779_v32, 0.0  ;;  %v2113_v42 = vmax.f32 %v1259_v33, 0.0  ;;  %v1782_v43 = vadd.f32 %v4069_v24, %v3131_v39  ;;  %v1262_v44 = vadd.f32 %v4069_v24, %v1261_v40  ;;  %v1773_v45 = vpop.f32.mrb[59].mxu1 }
 0x161   : > { %2372 = vst.msk [vmem:[%s3698_s6 + $0x1d0] sm:$0xff] %vm2313_vm3, %v2115_v36  ;;  %v2241_v46 = vmax.f32 %v1771_v37, 0.0  ;;  %v2116_v47 = vmax.f32 %v1270_v38, 0.0  ;;  %v1774_v48 = vadd.f32 %v4069_v24, %v1773_v45 }
 0x162   : > { %2500 = vst.msk [vmem:[%s3698_s6 + $0x5d0] sm:$0xff] %vm2313_vm3, %v2243_v41  ;;  %2370 = vst.msk [vmem:[%s3698_s6 + $0x1c0] sm:$0xff] %vm2313_vm3, %v2113_v42  ;;  %v2244_v49 = vmax.f32 %v1782_v43, 0.0  ;;  %v2114_v50 = vmax.f32 %v1262_v44, 0.0 }
 0x163   : > { %2498 = vst.msk [vmem:[%s3698_s6 + $0x5c0] sm:$0xff] %vm2313_vm3, %v2241_v46  ;;  %2373 = vst.msk [vmem:[%s3698_s6 + $0x1d8] sm:$0xff] %vm2313_vm3, %v2116_v47  ;;  %v2242_v51 = vmax.f32 %v1774_v48, 0.0 }
 0x164   : > { %2501 = vst.msk [vmem:[%s3698_s6 + $0x5d8] sm:$0xff] %vm2313_vm3, %v2244_v49  ;;  %2371 = vst.msk [vmem:[%s3698_s6 + $0x1c8] sm:$0xff] %vm2313_vm3, %v2114_v50  ;;  %v3006_v52 = vpop.f32.mrb[60].mxu0 }
 0x165   : > { %2499 = vst.msk [vmem:[%s3698_s6 + $0x5c8] sm:$0xff] %vm2313_vm3, %v2242_v51  ;;  %v1283_v53 = vadd.f32 %v4069_v24, %v3006_v52  ;;  %v3134_v54 = vpop.f32.mrb[60].mxu1  ;;  %v1274_v55 = vpop.f32.mrb[61].mxu0 }
 0x166   : > { %v1795_v56 = vadd.f32 %v4069_v24, %v3134_v54  ;;  %v1275_v57 = vadd.f32 %v4069_v24, %v1274_v55  ;;  %v1786_v58 = vpop.f32.mrb[61].mxu1  ;;  %v3007_v59 = vpop.f32.mrb[62].mxu0 }
 0x167   : > { %v2119_v60 = vmax.f32 %v1283_v53, 0.0  ;;  %v1787_v61 = vadd.f32 %v4069_v24, %v1786_v58  ;;  %v1286_v62 = vadd.f32 %v4069_v24, %v3007_v59  ;;  %v3135_v63 = vpop.f32.mrb[62].mxu1  ;;  %v1277_v0 = vpop.f32.mrb[63].mxu0 }
 0x168   : > { %v2247_v1 = vmax.f32 %v1795_v56, 0.0  ;;  %v2117_v2 = vmax.f32 %v1275_v57, 0.0  ;;  %v1798_v3 = vadd.f32 %v4069_v24, %v3135_v63  ;;  %v1278_v4 = vadd.f32 %v4069_v24, %v1277_v0  ;;  %v1789_v5 = vpop.f32.mrb[63].mxu1 }
 0x169   : > { %2376 = vst.msk [vmem:[%s3698_s6 + $0x1f0] sm:$0xff] %vm2313_vm3, %v2119_v60  ;;  %v2245_v6 = vmax.f32 %v1787_v61, 0.0  ;;  %v2120_v7 = vmax.f32 %v1286_v62, 0.0  ;;  %v1790_v8 = vadd.f32 %v4069_v24, %v1789_v5 }
 0x16a   : > { %2504 = vst.msk [vmem:[%s3698_s6 + $0x5f0] sm:$0xff] %vm2313_vm3, %v2247_v1  ;;  %2374 = vst.msk [vmem:[%s3698_s6 + $0x1e0] sm:$0xff] %vm2313_vm3, %v2117_v2  ;;  %v2248_v9 = vmax.f32 %v1798_v3, 0.0  ;;  %v2118_v10 = vmax.f32 %v1278_v4, 0.0 }
 0x16b   : > { %2502 = vst.msk [vmem:[%s3698_s6 + $0x5e0] sm:$0xff] %vm2313_vm3, %v2245_v6  ;;  %2377 = vst.msk [vmem:[%s3698_s6 + $0x1f8] sm:$0xff] %vm2313_vm3, %v2120_v7  ;;  %v2246_v11 = vmax.f32 %v1790_v8, 0.0 }
 0x16c   : > { %2505 = vst.msk [vmem:[%s3698_s6 + $0x5f8] sm:$0xff] %vm2313_vm3, %v2248_v9  ;;  %2375 = vst.msk [vmem:[%s3698_s6 + $0x1e8] sm:$0xff] %vm2313_vm3, %v2118_v10  ;;  %v3010_v12 = vpop.f32.mrb[64].mxu0 }
 0x16d   : > { %2503 = vst.msk [vmem:[%s3698_s6 + $0x5e8] sm:$0xff] %vm2313_vm3, %v2246_v11  ;;  %v1299_v13 = vadd.f32 %v4069_v24, %v3010_v12  ;;  %v3138_v14 = vpop.f32.mrb[64].mxu1  ;;  %v1290_v16 = vpop.f32.mrb[65].mxu0 }
 0x16e   : > { %v1811_v17 = vadd.f32 %v4069_v24, %v3138_v14  ;;  %v1291_v18 = vadd.f32 %v4069_v24, %v1290_v16  ;;  %v1802_v19 = vpop.f32.mrb[65].mxu1  ;;  %v3011_v20 = vpop.f32.mrb[66].mxu0 }
 0x16f   : > { %v2123_v21 = vmax.f32 %v1299_v13, 0.0  ;;  %v1803_v22 = vadd.f32 %v4069_v24, %v1802_v19  ;;  %v1302_v23 = vadd.f32 %v4069_v24, %v3011_v20  ;;  %v3139_v25 = vpop.f32.mrb[66].mxu1  ;;  %v1293_v26 = vpop.f32.mrb[67].mxu0 }
 0x170   : > { %v2251_v27 = vmax.f32 %v1811_v17, 0.0  ;;  %v2121_v15 = vmax.f32 %v1291_v18, 0.0  ;;  %v1814_v28 = vadd.f32 %v4069_v24, %v3139_v25  ;;  %v1294_v29 = vadd.f32 %v4069_v24, %v1293_v26  ;;  %v1805_v30 = vpop.f32.mrb[67].mxu1 }
 0x171   : > { %2380 = vst.msk [vmem:[%s3698_s6 + $0x210] sm:$0xff] %vm2313_vm3, %v2123_v21  ;;  %v2249_v31 = vmax.f32 %v1803_v22, 0.0  ;;  %v2124_v32 = vmax.f32 %v1302_v23, 0.0  ;;  %v1806_v33 = vadd.f32 %v4069_v24, %v1805_v30 }
 0x172   : > { %2508 = vst.msk [vmem:[%s3698_s6 + $0x610] sm:$0xff] %vm2313_vm3, %v2251_v27  ;;  %2378 = vst.msk [vmem:[%s3698_s6 + $0x200] sm:$0xff] %vm2313_vm3, %v2121_v15  ;;  %v2252_v34 = vmax.f32 %v1814_v28, 0.0  ;;  %v2122_v35 = vmax.f32 %v1294_v29, 0.0 }
 0x173   : > { %2506 = vst.msk [vmem:[%s3698_s6 + $0x600] sm:$0xff] %vm2313_vm3, %v2249_v31  ;;  %2381 = vst.msk [vmem:[%s3698_s6 + $0x218] sm:$0xff] %vm2313_vm3, %v2124_v32  ;;  %v2250_v36 = vmax.f32 %v1806_v33, 0.0 }
 0x174   : > { %2509 = vst.msk [vmem:[%s3698_s6 + $0x618] sm:$0xff] %vm2313_vm3, %v2252_v34  ;;  %2379 = vst.msk [vmem:[%s3698_s6 + $0x208] sm:$0xff] %vm2313_vm3, %v2122_v35  ;;  %v3014_v37 = vpop.f32.mrb[68].mxu0 }
 0x175   : > { %2507 = vst.msk [vmem:[%s3698_s6 + $0x608] sm:$0xff] %vm2313_vm3, %v2250_v36  ;;  %v1315_v38 = vadd.f32 %v4069_v24, %v3014_v37  ;;  %v3142_v39 = vpop.f32.mrb[68].mxu1  ;;  %v1306_v40 = vpop.f32.mrb[69].mxu0 }
 0x176   : > { %v1827_v41 = vadd.f32 %v4069_v24, %v3142_v39  ;;  %v1307_v42 = vadd.f32 %v4069_v24, %v1306_v40  ;;  %v1818_v43 = vpop.f32.mrb[69].mxu1  ;;  %v3015_v44 = vpop.f32.mrb[70].mxu0 }
 0x177   : > { %v2127_v45 = vmax.f32 %v1315_v38, 0.0  ;;  %v1819_v46 = vadd.f32 %v4069_v24, %v1818_v43  ;;  %v1318_v47 = vadd.f32 %v4069_v24, %v3015_v44  ;;  %v3143_v48 = vpop.f32.mrb[70].mxu1  ;;  %v1309_v49 = vpop.f32.mrb[71].mxu0 }
 0x178   : > { %v2255_v50 = vmax.f32 %v1827_v41, 0.0  ;;  %v2125_v51 = vmax.f32 %v1307_v42, 0.0  ;;  %v1830_v52 = vadd.f32 %v4069_v24, %v3143_v48  ;;  %v1310_v53 = vadd.f32 %v4069_v24, %v1309_v49  ;;  %v1821_v54 = vpop.f32.mrb[71].mxu1 }
 0x179   : > { %2384 = vst.msk [vmem:[%s3698_s6 + $0x230] sm:$0xff] %vm2313_vm3, %v2127_v45  ;;  %v2253_v55 = vmax.f32 %v1819_v46, 0.0  ;;  %v2128_v56 = vmax.f32 %v1318_v47, 0.0  ;;  %v1822_v57 = vadd.f32 %v4069_v24, %v1821_v54 }
 0x17a   : > { %2512 = vst.msk [vmem:[%s3698_s6 + $0x630] sm:$0xff] %vm2313_vm3, %v2255_v50  ;;  %2382 = vst.msk [vmem:[%s3698_s6 + $0x220] sm:$0xff] %vm2313_vm3, %v2125_v51  ;;  %v2256_v58 = vmax.f32 %v1830_v52, 0.0  ;;  %v2126_v59 = vmax.f32 %v1310_v53, 0.0 }
 0x17b   : > { %2510 = vst.msk [vmem:[%s3698_s6 + $0x620] sm:$0xff] %vm2313_vm3, %v2253_v55  ;;  %2385 = vst.msk [vmem:[%s3698_s6 + $0x238] sm:$0xff] %vm2313_vm3, %v2128_v56  ;;  %v2254_v60 = vmax.f32 %v1822_v57, 0.0 }
 0x17c   : > { %2513 = vst.msk [vmem:[%s3698_s6 + $0x638] sm:$0xff] %vm2313_vm3, %v2256_v58  ;;  %2383 = vst.msk [vmem:[%s3698_s6 + $0x228] sm:$0xff] %vm2313_vm3, %v2126_v59  ;;  %v3018_v61 = vpop.f32.mrb[72].mxu0 }
 0x17d   : > { %2511 = vst.msk [vmem:[%s3698_s6 + $0x628] sm:$0xff] %vm2313_vm3, %v2254_v60  ;;  %v1331_v62 = vadd.f32 %v4069_v24, %v3018_v61  ;;  %v3146_v63 = vpop.f32.mrb[72].mxu1  ;;  %v1322_v0 = vpop.f32.mrb[73].mxu0 }
 0x17e   : > { %v1843_v1 = vadd.f32 %v4069_v24, %v3146_v63  ;;  %v1323_v2 = vadd.f32 %v4069_v24, %v1322_v0  ;;  %v1834_v3 = vpop.f32.mrb[73].mxu1  ;;  %v3019_v4 = vpop.f32.mrb[74].mxu0 }
 0x17f   : > { %v2131_v5 = vmax.f32 %v1331_v62, 0.0  ;;  %v1835_v6 = vadd.f32 %v4069_v24, %v1834_v3  ;;  %v1334_v7 = vadd.f32 %v4069_v24, %v3019_v4  ;;  %v3147_v8 = vpop.f32.mrb[74].mxu1  ;;  %v1325_v9 = vpop.f32.mrb[75].mxu0 }
 0x180   : > { %v2259_v10 = vmax.f32 %v1843_v1, 0.0  ;;  %v2129_v11 = vmax.f32 %v1323_v2, 0.0  ;;  %v1846_v12 = vadd.f32 %v4069_v24, %v3147_v8  ;;  %v1326_v13 = vadd.f32 %v4069_v24, %v1325_v9  ;;  %v1837_v14 = vpop.f32.mrb[75].mxu1 }
 0x181   : > { %2388 = vst.msk [vmem:[%s3698_s6 + $0x250] sm:$0xff] %vm2313_vm3, %v2131_v5  ;;  %v2257_v16 = vmax.f32 %v1835_v6, 0.0  ;;  %v2132_v17 = vmax.f32 %v1334_v7, 0.0  ;;  %v1838_v18 = vadd.f32 %v4069_v24, %v1837_v14 }
 0x182   : > { %2516 = vst.msk [vmem:[%s3698_s6 + $0x650] sm:$0xff] %vm2313_vm3, %v2259_v10  ;;  %2386 = vst.msk [vmem:[%s3698_s6 + $0x240] sm:$0xff] %vm2313_vm3, %v2129_v11  ;;  %v2260_v19 = vmax.f32 %v1846_v12, 0.0  ;;  %v2130_v20 = vmax.f32 %v1326_v13, 0.0 }
 0x183   : > { %2514 = vst.msk [vmem:[%s3698_s6 + $0x640] sm:$0xff] %vm2313_vm3, %v2257_v16  ;;  %2389 = vst.msk [vmem:[%s3698_s6 + $0x258] sm:$0xff] %vm2313_vm3, %v2132_v17  ;;  %v2258_v21 = vmax.f32 %v1838_v18, 0.0 }
 0x184   : > { %2517 = vst.msk [vmem:[%s3698_s6 + $0x658] sm:$0xff] %vm2313_vm3, %v2260_v19  ;;  %2387 = vst.msk [vmem:[%s3698_s6 + $0x248] sm:$0xff] %vm2313_vm3, %v2130_v20  ;;  %v3022_v22 = vpop.f32.mrb[76].mxu0 }
 0x185   : > { %2515 = vst.msk [vmem:[%s3698_s6 + $0x648] sm:$0xff] %vm2313_vm3, %v2258_v21  ;;  %v1347_v23 = vadd.f32 %v4069_v24, %v3022_v22  ;;  %v3150_v25 = vpop.f32.mrb[76].mxu1  ;;  %v1338_v26 = vpop.f32.mrb[77].mxu0 }
 0x186   : > { %v1859_v27 = vadd.f32 %v4069_v24, %v3150_v25  ;;  %v1339_v15 = vadd.f32 %v4069_v24, %v1338_v26  ;;  %v1850_v28 = vpop.f32.mrb[77].mxu1  ;;  %v3023_v29 = vpop.f32.mrb[78].mxu0 }
 0x187   : > { %v2135_v30 = vmax.f32 %v1347_v23, 0.0  ;;  %v1851_v31 = vadd.f32 %v4069_v24, %v1850_v28  ;;  %v1350_v32 = vadd.f32 %v4069_v24, %v3023_v29  ;;  %v3151_v33 = vpop.f32.mrb[78].mxu1  ;;  %v1341_v34 = vpop.f32.mrb[79].mxu0 }
 0x188   : > { %v2263_v35 = vmax.f32 %v1859_v27, 0.0  ;;  %v2133_v36 = vmax.f32 %v1339_v15, 0.0  ;;  %v1862_v37 = vadd.f32 %v4069_v24, %v3151_v33  ;;  %v1342_v38 = vadd.f32 %v4069_v24, %v1341_v34  ;;  %v1853_v39 = vpop.f32.mrb[79].mxu1 }
 0x189   : > { %2392 = vst.msk [vmem:[%s3698_s6 + $0x270] sm:$0xff] %vm2313_vm3, %v2135_v30  ;;  %v2261_v40 = vmax.f32 %v1851_v31, 0.0  ;;  %v2136_v41 = vmax.f32 %v1350_v32, 0.0  ;;  %v1854_v42 = vadd.f32 %v4069_v24, %v1853_v39 }
 0x18a   : > { %2520 = vst.msk [vmem:[%s3698_s6 + $0x670] sm:$0xff] %vm2313_vm3, %v2263_v35  ;;  %2390 = vst.msk [vmem:[%s3698_s6 + $0x260] sm:$0xff] %vm2313_vm3, %v2133_v36  ;;  %v2264_v43 = vmax.f32 %v1862_v37, 0.0  ;;  %v2134_v44 = vmax.f32 %v1342_v38, 0.0 }
 0x18b   : > { %2518 = vst.msk [vmem:[%s3698_s6 + $0x660] sm:$0xff] %vm2313_vm3, %v2261_v40  ;;  %2393 = vst.msk [vmem:[%s3698_s6 + $0x278] sm:$0xff] %vm2313_vm3, %v2136_v41  ;;  %v2262_v45 = vmax.f32 %v1854_v42, 0.0 }
 0x18c   : > { %2521 = vst.msk [vmem:[%s3698_s6 + $0x678] sm:$0xff] %vm2313_vm3, %v2264_v43  ;;  %2391 = vst.msk [vmem:[%s3698_s6 + $0x268] sm:$0xff] %vm2313_vm3, %v2134_v44  ;;  %v3026_v46 = vpop.f32.mrb[80].mxu0 }
 0x18d   : > { %2519 = vst.msk [vmem:[%s3698_s6 + $0x668] sm:$0xff] %vm2313_vm3, %v2262_v45  ;;  %v1363_v47 = vadd.f32 %v4069_v24, %v3026_v46  ;;  %v3154_v48 = vpop.f32.mrb[80].mxu1  ;;  %v1354_v49 = vpop.f32.mrb[81].mxu0 }
 0x18e   : > { %v1875_v50 = vadd.f32 %v4069_v24, %v3154_v48  ;;  %v1355_v51 = vadd.f32 %v4069_v24, %v1354_v49  ;;  %v1866_v52 = vpop.f32.mrb[81].mxu1  ;;  %v3027_v53 = vpop.f32.mrb[82].mxu0 }
 0x18f   : > { %v2139_v54 = vmax.f32 %v1363_v47, 0.0  ;;  %v1867_v55 = vadd.f32 %v4069_v24, %v1866_v52  ;;  %v1366_v56 = vadd.f32 %v4069_v24, %v3027_v53  ;;  %v3155_v57 = vpop.f32.mrb[82].mxu1  ;;  %v1357_v58 = vpop.f32.mrb[83].mxu0 }
 0x190   : > { %v2267_v59 = vmax.f32 %v1875_v50, 0.0  ;;  %v2137_v60 = vmax.f32 %v1355_v51, 0.0  ;;  %v1878_v61 = vadd.f32 %v4069_v24, %v3155_v57  ;;  %v1358_v62 = vadd.f32 %v4069_v24, %v1357_v58  ;;  %v1869_v63 = vpop.f32.mrb[83].mxu1 }
 0x191   : > { %2396 = vst.msk [vmem:[%s3698_s6 + $0x290] sm:$0xff] %vm2313_vm3, %v2139_v54  ;;  %v2265_v0 = vmax.f32 %v1867_v55, 0.0  ;;  %v2140_v1 = vmax.f32 %v1366_v56, 0.0  ;;  %v1870_v2 = vadd.f32 %v4069_v24, %v1869_v63 }
 0x192   : > { %2524 = vst.msk [vmem:[%s3698_s6 + $0x690] sm:$0xff] %vm2313_vm3, %v2267_v59  ;;  %2394 = vst.msk [vmem:[%s3698_s6 + $0x280] sm:$0xff] %vm2313_vm3, %v2137_v60  ;;  %v2268_v3 = vmax.f32 %v1878_v61, 0.0  ;;  %v2138_v4 = vmax.f32 %v1358_v62, 0.0 }
 0x193   : > { %2522 = vst.msk [vmem:[%s3698_s6 + $0x680] sm:$0xff] %vm2313_vm3, %v2265_v0  ;;  %2397 = vst.msk [vmem:[%s3698_s6 + $0x298] sm:$0xff] %vm2313_vm3, %v2140_v1  ;;  %v2266_v5 = vmax.f32 %v1870_v2, 0.0 }
 0x194   : > { %2525 = vst.msk [vmem:[%s3698_s6 + $0x698] sm:$0xff] %vm2313_vm3, %v2268_v3  ;;  %2395 = vst.msk [vmem:[%s3698_s6 + $0x288] sm:$0xff] %vm2313_vm3, %v2138_v4  ;;  %v3030_v6 = vpop.f32.mrb[84].mxu0 }
 0x195   : > { %2523 = vst.msk [vmem:[%s3698_s6 + $0x688] sm:$0xff] %vm2313_vm3, %v2266_v5  ;;  %v1379_v7 = vadd.f32 %v4069_v24, %v3030_v6  ;;  %v3158_v8 = vpop.f32.mrb[84].mxu1  ;;  %v1370_v9 = vpop.f32.mrb[85].mxu0 }
 0x196   : > { %v1891_v10 = vadd.f32 %v4069_v24, %v3158_v8  ;;  %v1371_v11 = vadd.f32 %v4069_v24, %v1370_v9  ;;  %v1882_v12 = vpop.f32.mrb[85].mxu1  ;;  %v3031_v13 = vpop.f32.mrb[86].mxu0 }
 0x197   : > { %v2143_v14 = vmax.f32 %v1379_v7, 0.0  ;;  %v1883_v16 = vadd.f32 %v4069_v24, %v1882_v12  ;;  %v1382_v17 = vadd.f32 %v4069_v24, %v3031_v13  ;;  %v3159_v18 = vpop.f32.mrb[86].mxu1  ;;  %v1373_v19 = vpop.f32.mrb[87].mxu0 }
 0x198   : > { %v2271_v20 = vmax.f32 %v1891_v10, 0.0  ;;  %v2141_v21 = vmax.f32 %v1371_v11, 0.0  ;;  %v1894_v22 = vadd.f32 %v4069_v24, %v3159_v18  ;;  %v1374_v23 = vadd.f32 %v4069_v24, %v1373_v19  ;;  %v1885_v25 = vpop.f32.mrb[87].mxu1 }
 0x199   : > { %2400 = vst.msk [vmem:[%s3698_s6 + $0x2b0] sm:$0xff] %vm2313_vm3, %v2143_v14  ;;  %v2269_v26 = vmax.f32 %v1883_v16, 0.0  ;;  %v2144_v27 = vmax.f32 %v1382_v17, 0.0  ;;  %v1886_v15 = vadd.f32 %v4069_v24, %v1885_v25 }
 0x19a   : > { %2528 = vst.msk [vmem:[%s3698_s6 + $0x6b0] sm:$0xff] %vm2313_vm3, %v2271_v20  ;;  %2398 = vst.msk [vmem:[%s3698_s6 + $0x2a0] sm:$0xff] %vm2313_vm3, %v2141_v21  ;;  %v2272_v28 = vmax.f32 %v1894_v22, 0.0  ;;  %v2142_v29 = vmax.f32 %v1374_v23, 0.0 }
 0x19b   : > { %2526 = vst.msk [vmem:[%s3698_s6 + $0x6a0] sm:$0xff] %vm2313_vm3, %v2269_v26  ;;  %2401 = vst.msk [vmem:[%s3698_s6 + $0x2b8] sm:$0xff] %vm2313_vm3, %v2144_v27  ;;  %v2270_v30 = vmax.f32 %v1886_v15, 0.0 }
 0x19c   : > { %2529 = vst.msk [vmem:[%s3698_s6 + $0x6b8] sm:$0xff] %vm2313_vm3, %v2272_v28  ;;  %2399 = vst.msk [vmem:[%s3698_s6 + $0x2a8] sm:$0xff] %vm2313_vm3, %v2142_v29  ;;  %v3034_v31 = vpop.f32.mrb[88].mxu0 }
 0x19d   : > { %2527 = vst.msk [vmem:[%s3698_s6 + $0x6a8] sm:$0xff] %vm2313_vm3, %v2270_v30  ;;  %v1395_v32 = vadd.f32 %v4069_v24, %v3034_v31  ;;  %v3162_v33 = vpop.f32.mrb[88].mxu1  ;;  %v1386_v34 = vpop.f32.mrb[89].mxu0 }
 0x19e   : > { %v1907_v35 = vadd.f32 %v4069_v24, %v3162_v33  ;;  %v1387_v36 = vadd.f32 %v4069_v24, %v1386_v34  ;;  %v1898_v37 = vpop.f32.mrb[89].mxu1  ;;  %v3035_v38 = vpop.f32.mrb[90].mxu0 }
 0x19f   : > { %v2147_v39 = vmax.f32 %v1395_v32, 0.0  ;;  %v1899_v40 = vadd.f32 %v4069_v24, %v1898_v37  ;;  %v1398_v41 = vadd.f32 %v4069_v24, %v3035_v38  ;;  %v3163_v42 = vpop.f32.mrb[90].mxu1  ;;  %v1389_v43 = vpop.f32.mrb[91].mxu0 }
 0x1a0   : > { %v2275_v44 = vmax.f32 %v1907_v35, 0.0  ;;  %v2145_v45 = vmax.f32 %v1387_v36, 0.0  ;;  %v1910_v46 = vadd.f32 %v4069_v24, %v3163_v42  ;;  %v1390_v47 = vadd.f32 %v4069_v24, %v1389_v43  ;;  %v1901_v48 = vpop.f32.mrb[91].mxu1 }
 0x1a1   : > { %2404 = vst.msk [vmem:[%s3698_s6 + $0x2d0] sm:$0xff] %vm2313_vm3, %v2147_v39  ;;  %v2273_v49 = vmax.f32 %v1899_v40, 0.0  ;;  %v2148_v50 = vmax.f32 %v1398_v41, 0.0  ;;  %v1902_v51 = vadd.f32 %v4069_v24, %v1901_v48 }
 0x1a2   : > { %2532 = vst.msk [vmem:[%s3698_s6 + $0x6d0] sm:$0xff] %vm2313_vm3, %v2275_v44  ;;  %2402 = vst.msk [vmem:[%s3698_s6 + $0x2c0] sm:$0xff] %vm2313_vm3, %v2145_v45  ;;  %v2276_v52 = vmax.f32 %v1910_v46, 0.0  ;;  %v2146_v53 = vmax.f32 %v1390_v47, 0.0 }
 0x1a3   : > { %2530 = vst.msk [vmem:[%s3698_s6 + $0x6c0] sm:$0xff] %vm2313_vm3, %v2273_v49  ;;  %2405 = vst.msk [vmem:[%s3698_s6 + $0x2d8] sm:$0xff] %vm2313_vm3, %v2148_v50  ;;  %v2274_v54 = vmax.f32 %v1902_v51, 0.0 }
 0x1a4   : > { %2533 = vst.msk [vmem:[%s3698_s6 + $0x6d8] sm:$0xff] %vm2313_vm3, %v2276_v52  ;;  %2403 = vst.msk [vmem:[%s3698_s6 + $0x2c8] sm:$0xff] %vm2313_vm3, %v2146_v53  ;;  %v3038_v55 = vpop.f32.mrb[92].mxu0 }
 0x1a5   : > { %2531 = vst.msk [vmem:[%s3698_s6 + $0x6c8] sm:$0xff] %vm2313_vm3, %v2274_v54  ;;  %v1411_v56 = vadd.f32 %v4069_v24, %v3038_v55  ;;  %v3166_v57 = vpop.f32.mrb[92].mxu1  ;;  %v1402_v58 = vpop.f32.mrb[93].mxu0 }
 0x1a6   : > { %v1923_v59 = vadd.f32 %v4069_v24, %v3166_v57  ;;  %v1403_v60 = vadd.f32 %v4069_v24, %v1402_v58  ;;  %v1914_v61 = vpop.f32.mrb[93].mxu1  ;;  %v3039_v62 = vpop.f32.mrb[94].mxu0 }
 0x1a7   : > { %v2151_v63 = vmax.f32 %v1411_v56, 0.0  ;;  %v1915_v0 = vadd.f32 %v4069_v24, %v1914_v61  ;;  %v1414_v1 = vadd.f32 %v4069_v24, %v3039_v62  ;;  %v3167_v2 = vpop.f32.mrb[94].mxu1  ;;  %v1405_v3 = vpop.f32.mrb[95].mxu0 }
 0x1a8   : > { %v2279_v4 = vmax.f32 %v1923_v59, 0.0  ;;  %v2149_v5 = vmax.f32 %v1403_v60, 0.0  ;;  %v1926_v6 = vadd.f32 %v4069_v24, %v3167_v2  ;;  %v1406_v7 = vadd.f32 %v4069_v24, %v1405_v3  ;;  %v1917_v8 = vpop.f32.mrb[95].mxu1 }
 0x1a9   : > { %2408 = vst.msk [vmem:[%s3698_s6 + $0x2f0] sm:$0xff] %vm2313_vm3, %v2151_v63  ;;  %v2277_v9 = vmax.f32 %v1915_v0, 0.0  ;;  %v2152_v10 = vmax.f32 %v1414_v1, 0.0  ;;  %v1918_v11 = vadd.f32 %v4069_v24, %v1917_v8 }
 0x1aa   : > { %2536 = vst.msk [vmem:[%s3698_s6 + $0x6f0] sm:$0xff] %vm2313_vm3, %v2279_v4  ;;  %2406 = vst.msk [vmem:[%s3698_s6 + $0x2e0] sm:$0xff] %vm2313_vm3, %v2149_v5  ;;  %v2280_v12 = vmax.f32 %v1926_v6, 0.0  ;;  %v2150_v13 = vmax.f32 %v1406_v7, 0.0 }
 0x1ab   : > { %2534 = vst.msk [vmem:[%s3698_s6 + $0x6e0] sm:$0xff] %vm2313_vm3, %v2277_v9  ;;  %2409 = vst.msk [vmem:[%s3698_s6 + $0x2f8] sm:$0xff] %vm2313_vm3, %v2152_v10  ;;  %v2278_v14 = vmax.f32 %v1918_v11, 0.0 }
 0x1ac   : > { %2537 = vst.msk [vmem:[%s3698_s6 + $0x6f8] sm:$0xff] %vm2313_vm3, %v2280_v12  ;;  %2407 = vst.msk [vmem:[%s3698_s6 + $0x2e8] sm:$0xff] %vm2313_vm3, %v2150_v13  ;;  %v3042_v16 = vpop.f32.mrb[96].mxu0 }
 0x1ad   : > { %2535 = vst.msk [vmem:[%s3698_s6 + $0x6e8] sm:$0xff] %vm2313_vm3, %v2278_v14  ;;  %v1427_v17 = vadd.f32 %v4069_v24, %v3042_v16  ;;  %v3170_v18 = vpop.f32.mrb[96].mxu1  ;;  %v1418_v19 = vpop.f32.mrb[97].mxu0 }
 0x1ae   : > { %v1939_v20 = vadd.f32 %v4069_v24, %v3170_v18  ;;  %v1419_v21 = vadd.f32 %v4069_v24, %v1418_v19  ;;  %v1930_v22 = vpop.f32.mrb[97].mxu1  ;;  %v3043_v23 = vpop.f32.mrb[98].mxu0 }
 0x1af   : > { %v2155_v25 = vmax.f32 %v1427_v17, 0.0  ;;  %v1931_v26 = vadd.f32 %v4069_v24, %v1930_v22  ;;  %v1430_v27 = vadd.f32 %v4069_v24, %v3043_v23  ;;  %v3171_v15 = vpop.f32.mrb[98].mxu1  ;;  %v1421_v28 = vpop.f32.mrb[99].mxu0 }
 0x1b0   : > { %v2283_v29 = vmax.f32 %v1939_v20, 0.0  ;;  %v2153_v30 = vmax.f32 %v1419_v21, 0.0  ;;  %v1942_v31 = vadd.f32 %v4069_v24, %v3171_v15  ;;  %v1422_v32 = vadd.f32 %v4069_v24, %v1421_v28  ;;  %v1933_v33 = vpop.f32.mrb[99].mxu1 }
 0x1b1   : > { %2412 = vst.msk [vmem:[%s3698_s6 + $0x310] sm:$0xff] %vm2313_vm3, %v2155_v25  ;;  %v2281_v34 = vmax.f32 %v1931_v26, 0.0  ;;  %v2156_v35 = vmax.f32 %v1430_v27, 0.0  ;;  %v1934_v36 = vadd.f32 %v4069_v24, %v1933_v33 }
 0x1b2   : > { %2540 = vst.msk [vmem:[%s3698_s6 + $0x710] sm:$0xff] %vm2313_vm3, %v2283_v29  ;;  %2410 = vst.msk [vmem:[%s3698_s6 + $0x300] sm:$0xff] %vm2313_vm3, %v2153_v30  ;;  %v2284_v37 = vmax.f32 %v1942_v31, 0.0  ;;  %v2154_v38 = vmax.f32 %v1422_v32, 0.0 }
 0x1b3   : > { %2538 = vst.msk [vmem:[%s3698_s6 + $0x700] sm:$0xff] %vm2313_vm3, %v2281_v34  ;;  %2413 = vst.msk [vmem:[%s3698_s6 + $0x318] sm:$0xff] %vm2313_vm3, %v2156_v35  ;;  %v2282_v39 = vmax.f32 %v1934_v36, 0.0 }
 0x1b4   : > { %2541 = vst.msk [vmem:[%s3698_s6 + $0x718] sm:$0xff] %vm2313_vm3, %v2284_v37  ;;  %2411 = vst.msk [vmem:[%s3698_s6 + $0x308] sm:$0xff] %vm2313_vm3, %v2154_v38  ;;  %v3046_v40 = vpop.f32.mrb[100].mxu0 }
 0x1b5   : > { %2539 = vst.msk [vmem:[%s3698_s6 + $0x708] sm:$0xff] %vm2313_vm3, %v2282_v39  ;;  %v1443_v41 = vadd.f32 %v4069_v24, %v3046_v40  ;;  %v3174_v42 = vpop.f32.mrb[100].mxu1  ;;  %v1434_v43 = vpop.f32.mrb[101].mxu0 }
 0x1b6   : > { %v1955_v44 = vadd.f32 %v4069_v24, %v3174_v42  ;;  %v1435_v45 = vadd.f32 %v4069_v24, %v1434_v43  ;;  %v1946_v46 = vpop.f32.mrb[101].mxu1  ;;  %v3047_v47 = vpop.f32.mrb[102].mxu0 }
 0x1b7   : > { %v2159_v48 = vmax.f32 %v1443_v41, 0.0  ;;  %v1947_v49 = vadd.f32 %v4069_v24, %v1946_v46  ;;  %v1446_v50 = vadd.f32 %v4069_v24, %v3047_v47  ;;  %v3175_v51 = vpop.f32.mrb[102].mxu1  ;;  %v1437_v52 = vpop.f32.mrb[103].mxu0 }
 0x1b8   : > { %v2287_v53 = vmax.f32 %v1955_v44, 0.0  ;;  %v2157_v54 = vmax.f32 %v1435_v45, 0.0  ;;  %v1958_v55 = vadd.f32 %v4069_v24, %v3175_v51  ;;  %v1438_v56 = vadd.f32 %v4069_v24, %v1437_v52  ;;  %v1949_v57 = vpop.f32.mrb[103].mxu1 }
 0x1b9   : > { %2416 = vst.msk [vmem:[%s3698_s6 + $0x330] sm:$0xff] %vm2313_vm3, %v2159_v48  ;;  %v2285_v58 = vmax.f32 %v1947_v49, 0.0  ;;  %v2160_v59 = vmax.f32 %v1446_v50, 0.0  ;;  %v1950_v60 = vadd.f32 %v4069_v24, %v1949_v57 }
 0x1ba   : > { %2544 = vst.msk [vmem:[%s3698_s6 + $0x730] sm:$0xff] %vm2313_vm3, %v2287_v53  ;;  %2414 = vst.msk [vmem:[%s3698_s6 + $0x320] sm:$0xff] %vm2313_vm3, %v2157_v54  ;;  %v2288_v61 = vmax.f32 %v1958_v55, 0.0  ;;  %v2158_v62 = vmax.f32 %v1438_v56, 0.0 }
 0x1bb   : > { %2542 = vst.msk [vmem:[%s3698_s6 + $0x720] sm:$0xff] %vm2313_vm3, %v2285_v58  ;;  %2417 = vst.msk [vmem:[%s3698_s6 + $0x338] sm:$0xff] %vm2313_vm3, %v2160_v59  ;;  %v2286_v63 = vmax.f32 %v1950_v60, 0.0 }
 0x1bc   : > { %2545 = vst.msk [vmem:[%s3698_s6 + $0x738] sm:$0xff] %vm2313_vm3, %v2288_v61  ;;  %2415 = vst.msk [vmem:[%s3698_s6 + $0x328] sm:$0xff] %vm2313_vm3, %v2158_v62  ;;  %v3050_v0 = vpop.f32.mrb[104].mxu0 }
 0x1bd   : > { %2543 = vst.msk [vmem:[%s3698_s6 + $0x728] sm:$0xff] %vm2313_vm3, %v2286_v63  ;;  %v1459_v1 = vadd.f32 %v4069_v24, %v3050_v0  ;;  %v3178_v2 = vpop.f32.mrb[104].mxu1  ;;  %v1450_v3 = vpop.f32.mrb[105].mxu0 }
 0x1be   : > { %v1971_v4 = vadd.f32 %v4069_v24, %v3178_v2  ;;  %v1451_v5 = vadd.f32 %v4069_v24, %v1450_v3  ;;  %v1962_v6 = vpop.f32.mrb[105].mxu1  ;;  %v3051_v7 = vpop.f32.mrb[106].mxu0 }
 0x1bf   : > { %v2163_v8 = vmax.f32 %v1459_v1, 0.0  ;;  %v1963_v9 = vadd.f32 %v4069_v24, %v1962_v6  ;;  %v1462_v10 = vadd.f32 %v4069_v24, %v3051_v7  ;;  %v3179_v11 = vpop.f32.mrb[106].mxu1  ;;  %v1453_v12 = vpop.f32.mrb[107].mxu0 }
 0x1c0   : > { %v2291_v13 = vmax.f32 %v1971_v4, 0.0  ;;  %v2161_v14 = vmax.f32 %v1451_v5, 0.0  ;;  %v1974_v16 = vadd.f32 %v4069_v24, %v3179_v11  ;;  %v1454_v17 = vadd.f32 %v4069_v24, %v1453_v12  ;;  %v1965_v18 = vpop.f32.mrb[107].mxu1 }
 0x1c1   : > { %2420 = vst.msk [vmem:[%s3698_s6 + $0x350] sm:$0xff] %vm2313_vm3, %v2163_v8  ;;  %v2289_v19 = vmax.f32 %v1963_v9, 0.0  ;;  %v2164_v20 = vmax.f32 %v1462_v10, 0.0  ;;  %v1966_v21 = vadd.f32 %v4069_v24, %v1965_v18 }
 0x1c2   : > { %2548 = vst.msk [vmem:[%s3698_s6 + $0x750] sm:$0xff] %vm2313_vm3, %v2291_v13  ;;  %2418 = vst.msk [vmem:[%s3698_s6 + $0x340] sm:$0xff] %vm2313_vm3, %v2161_v14  ;;  %v2292_v22 = vmax.f32 %v1974_v16, 0.0  ;;  %v2162_v23 = vmax.f32 %v1454_v17, 0.0 }
 0x1c3   : > { %2546 = vst.msk [vmem:[%s3698_s6 + $0x740] sm:$0xff] %vm2313_vm3, %v2289_v19  ;;  %2421 = vst.msk [vmem:[%s3698_s6 + $0x358] sm:$0xff] %vm2313_vm3, %v2164_v20  ;;  %v2290_v25 = vmax.f32 %v1966_v21, 0.0 }
 0x1c4   : > { %2549 = vst.msk [vmem:[%s3698_s6 + $0x758] sm:$0xff] %vm2313_vm3, %v2292_v22  ;;  %2419 = vst.msk [vmem:[%s3698_s6 + $0x348] sm:$0xff] %vm2313_vm3, %v2162_v23  ;;  %v3054_v26 = vpop.f32.mrb[108].mxu0 }
 0x1c5   : > { %2547 = vst.msk [vmem:[%s3698_s6 + $0x748] sm:$0xff] %vm2313_vm3, %v2290_v25  ;;  %v1475_v27 = vadd.f32 %v4069_v24, %v3054_v26  ;;  %v3182_v15 = vpop.f32.mrb[108].mxu1  ;;  %v1466_v28 = vpop.f32.mrb[109].mxu0 }
 0x1c6   : > { %v1987_v29 = vadd.f32 %v4069_v24, %v3182_v15  ;;  %v1467_v30 = vadd.f32 %v4069_v24, %v1466_v28  ;;  %v1978_v31 = vpop.f32.mrb[109].mxu1  ;;  %v3055_v32 = vpop.f32.mrb[110].mxu0 }
 0x1c7   : > { %v2167_v33 = vmax.f32 %v1475_v27, 0.0  ;;  %v1979_v34 = vadd.f32 %v4069_v24, %v1978_v31  ;;  %v1478_v35 = vadd.f32 %v4069_v24, %v3055_v32  ;;  %v3183_v36 = vpop.f32.mrb[110].mxu1  ;;  %v1469_v37 = vpop.f32.mrb[111].mxu0 }
 0x1c8   : > { %v2295_v38 = vmax.f32 %v1987_v29, 0.0  ;;  %v2165_v39 = vmax.f32 %v1467_v30, 0.0  ;;  %v1990_v40 = vadd.f32 %v4069_v24, %v3183_v36  ;;  %v1470_v41 = vadd.f32 %v4069_v24, %v1469_v37  ;;  %v1981_v42 = vpop.f32.mrb[111].mxu1  ;;  %v4458_v30 = vld [vmem:[%s4540_s2] ss:$0 sm:$0xff] }
 0x1c9   : > { %2424 = vst.msk [vmem:[%s3698_s6 + $0x370] sm:$0xff] %vm2313_vm3, %v2167_v33  ;;  %v2293_v43 = vmax.f32 %v1979_v34, 0.0  ;;  %v2168_v44 = vmax.f32 %v1478_v35, 0.0  ;;  %v1982_v45 = vadd.f32 %v4069_v24, %v1981_v42 }
 0x1ca   : > { %2552 = vst.msk [vmem:[%s3698_s6 + $0x770] sm:$0xff] %vm2313_vm3, %v2295_v38  ;;  %2422 = vst.msk [vmem:[%s3698_s6 + $0x360] sm:$0xff] %vm2313_vm3, %v2165_v39  ;;  %v2296_v46 = vmax.f32 %v1990_v40, 0.0  ;;  %v2166_v47 = vmax.f32 %v1470_v41, 0.0 }
 0x1cb   : > { %2550 = vst.msk [vmem:[%s3698_s6 + $0x760] sm:$0xff] %vm2313_vm3, %v2293_v43  ;;  %2425 = vst.msk [vmem:[%s3698_s6 + $0x378] sm:$0xff] %vm2313_vm3, %v2168_v44  ;;  %v2294_v48 = vmax.f32 %v1982_v45, 0.0 }
 0x1cc   : > { %2553 = vst.msk [vmem:[%s3698_s6 + $0x778] sm:$0xff] %vm2313_vm3, %v2296_v46  ;;  %2423 = vst.msk [vmem:[%s3698_s6 + $0x368] sm:$0xff] %vm2313_vm3, %v2166_v47  ;;  %v3058_v49 = vpop.f32.mrb[112].mxu0 }
 0x1cd   : > { %2551 = vst.msk [vmem:[%s3698_s6 + $0x768] sm:$0xff] %vm2313_vm3, %v2294_v48  ;;  %v1491_v50 = vadd.f32 %v4069_v24, %v3058_v49  ;;  %v3186_v51 = vpop.f32.mrb[112].mxu1  ;;  %v1482_v52 = vpop.f32.mrb[113].mxu0 }
 0x1ce   : > { %v2003_v53 = vadd.f32 %v4069_v24, %v3186_v51  ;;  %v1483_v54 = vadd.f32 %v4069_v24, %v1482_v52  ;;  %v1994_v55 = vpop.f32.mrb[113].mxu1  ;;  %v3059_v56 = vpop.f32.mrb[114].mxu0 }
 0x1cf   : > { %v2171_v57 = vmax.f32 %v1491_v50, 0.0  ;;  %v1995_v58 = vadd.f32 %v4069_v24, %v1994_v55  ;;  %v1494_v59 = vadd.f32 %v4069_v24, %v3059_v56  ;;  %v3187_v60 = vpop.f32.mrb[114].mxu1  ;;  %v1485_v61 = vpop.f32.mrb[115].mxu0 }
 0x1d0   : > { %v2299_v62 = vmax.f32 %v2003_v53, 0.0  ;;  %v2169_v63 = vmax.f32 %v1483_v54, 0.0  ;;  %v2006_v0 = vadd.f32 %v4069_v24, %v3187_v60  ;;  %v1486_v1 = vadd.f32 %v4069_v24, %v1485_v61  ;;  %v1997_v2 = vpop.f32.mrb[115].mxu1 }
 0x1d1   : > { %2428 = vst.msk [vmem:[%s3698_s6 + $0x390] sm:$0xff] %vm2313_vm3, %v2171_v57  ;;  %v2297_v3 = vmax.f32 %v1995_v58, 0.0  ;;  %v2172_v4 = vmax.f32 %v1494_v59, 0.0  ;;  %v1998_v5 = vadd.f32 %v4069_v24, %v1997_v2 }
 0x1d2   : > { %2556 = vst.msk [vmem:[%s3698_s6 + $0x790] sm:$0xff] %vm2313_vm3, %v2299_v62  ;;  %2426 = vst.msk [vmem:[%s3698_s6 + $0x380] sm:$0xff] %vm2313_vm3, %v2169_v63  ;;  %v2300_v6 = vmax.f32 %v2006_v0, 0.0  ;;  %v2170_v7 = vmax.f32 %v1486_v1, 0.0 }
 0x1d3   : > { %2554 = vst.msk [vmem:[%s3698_s6 + $0x780] sm:$0xff] %vm2313_vm3, %v2297_v3  ;;  %2429 = vst.msk [vmem:[%s3698_s6 + $0x398] sm:$0xff] %vm2313_vm3, %v2172_v4  ;;  %v2298_v8 = vmax.f32 %v1998_v5, 0.0 }
 0x1d4   : > { %2557 = vst.msk [vmem:[%s3698_s6 + $0x798] sm:$0xff] %vm2313_vm3, %v2300_v6  ;;  %2427 = vst.msk [vmem:[%s3698_s6 + $0x388] sm:$0xff] %vm2313_vm3, %v2170_v7  ;;  %v3062_v9 = vpop.f32.mrb[116].mxu0 }
 0x1d5   : > { %2555 = vst.msk [vmem:[%s3698_s6 + $0x788] sm:$0xff] %vm2313_vm3, %v2298_v8  ;;  %v1507_v10 = vadd.f32 %v4069_v24, %v3062_v9  ;;  %v3190_v11 = vpop.f32.mrb[116].mxu1  ;;  %v1498_v12 = vpop.f32.mrb[117].mxu0 }
 0x1d6   : > { %v2019_v13 = vadd.f32 %v4069_v24, %v3190_v11  ;;  %v1499_v14 = vadd.f32 %v4069_v24, %v1498_v12  ;;  %v2010_v16 = vpop.f32.mrb[117].mxu1  ;;  %v3063_v17 = vpop.f32.mrb[118].mxu0 }
 0x1d7   : > { %v2175_v18 = vmax.f32 %v1507_v10, 0.0  ;;  %v2011_v19 = vadd.f32 %v4069_v24, %v2010_v16  ;;  %v1510_v20 = vadd.f32 %v4069_v24, %v3063_v17  ;;  %v3191_v21 = vpop.f32.mrb[118].mxu1  ;;  %v1501_v22 = vpop.f32.mrb[119].mxu0 }
 0x1d8   : > { %v2303_v23 = vmax.f32 %v2019_v13, 0.0  ;;  %v2173_v25 = vmax.f32 %v1499_v14, 0.0  ;;  %v2022_v26 = vadd.f32 %v4069_v24, %v3191_v21  ;;  %v1502_v27 = vadd.f32 %v4069_v24, %v1501_v22  ;;  %v2013_v15 = vpop.f32.mrb[119].mxu1 }
 0x1d9   : > { %2432 = vst.msk [vmem:[%s3698_s6 + $0x3b0] sm:$0xff] %vm2313_vm3, %v2175_v18  ;;  %v2301_v28 = vmax.f32 %v2011_v19, 0.0  ;;  %v2176_v29 = vmax.f32 %v1510_v20, 0.0  ;;  %v2014_v31 = vadd.f32 %v4458_v30, %v2013_v15 }
 0x1da   : > { %2560 = vst.msk [vmem:[%s3698_s6 + $0x7b0] sm:$0xff] %vm2313_vm3, %v2303_v23  ;;  %2430 = vst.msk [vmem:[%s3698_s6 + $0x3a0] sm:$0xff] %vm2313_vm3, %v2173_v25  ;;  %v2304_v32 = vmax.f32 %v2022_v26, 0.0  ;;  %v2174_v33 = vmax.f32 %v1502_v27, 0.0 }
 0x1db   : > { %2558 = vst.msk [vmem:[%s3698_s6 + $0x7a0] sm:$0xff] %vm2313_vm3, %v2301_v28  ;;  %2433 = vst.msk [vmem:[%s3698_s6 + $0x3b8] sm:$0xff] %vm2313_vm3, %v2176_v29  ;;  %v2302_v24 = vmax.f32 %v2014_v31, 0.0 }
 0x1dc   : > { %2561 = vst.msk [vmem:[%s3698_s6 + $0x7b8] sm:$0xff] %vm2313_vm3, %v2304_v32  ;;  %2431 = vst.msk [vmem:[%s3698_s6 + $0x3a8] sm:$0xff] %vm2313_vm3, %v2174_v33  ;;  %v3066_v34 = vpop.f32.mrb[120].mxu0 }
 0x1dd   : > { %2559 = vst.msk [vmem:[%s3698_s6 + $0x7a8] sm:$0xff] %vm2313_vm3, %v2302_v24  ;;  %v1523_v35 = vadd.f32 %v4458_v30, %v3066_v34  ;;  %v3194_v36 = vpop.f32.mrb[120].mxu1  ;;  %v1514_v37 = vpop.f32.mrb[121].mxu0 }
 0x1de   : > { %v2035_v38 = vadd.f32 %v4458_v30, %v3194_v36  ;;  %v1515_v39 = vadd.f32 %v4458_v30, %v1514_v37  ;;  %v2026_v40 = vpop.f32.mrb[121].mxu1  ;;  %v3067_v41 = vpop.f32.mrb[122].mxu0 }
 0x1df   : > { %v2179_v42 = vmax.f32 %v1523_v35, 0.0  ;;  %v2027_v43 = vadd.f32 %v4458_v30, %v2026_v40  ;;  %v1526_v44 = vadd.f32 %v4458_v30, %v3067_v41  ;;  %v3195_v45 = vpop.f32.mrb[122].mxu1  ;;  %v1517_v46 = vpop.f32.mrb[123].mxu0 }
 0x1e0   : > { %v2307_v47 = vmax.f32 %v2035_v38, 0.0  ;;  %v2177_v48 = vmax.f32 %v1515_v39, 0.0  ;;  %v2038_v49 = vadd.f32 %v4458_v30, %v3195_v45  ;;  %v1518_v50 = vadd.f32 %v4458_v30, %v1517_v46  ;;  %v2029_v51 = vpop.f32.mrb[123].mxu1 }
 0x1e1   : > { %2436 = vst.msk [vmem:[%s3698_s6 + $0x3d0] sm:$0xff] %vm2313_vm3, %v2179_v42  ;;  %v2305_v52 = vmax.f32 %v2027_v43, 0.0  ;;  %v2180_v53 = vmax.f32 %v1526_v44, 0.0  ;;  %v2030_v54 = vadd.f32 %v4458_v30, %v2029_v51 }
 0x1e2   : > { %2564 = vst.msk [vmem:[%s3698_s6 + $0x7d0] sm:$0xff] %vm2313_vm3, %v2307_v47  ;;  %2434 = vst.msk [vmem:[%s3698_s6 + $0x3c0] sm:$0xff] %vm2313_vm3, %v2177_v48  ;;  %v2308_v55 = vmax.f32 %v2038_v49, 0.0  ;;  %v2178_v56 = vmax.f32 %v1518_v50, 0.0 }
 0x1e3   : > { %2562 = vst.msk [vmem:[%s3698_s6 + $0x7c0] sm:$0xff] %vm2313_vm3, %v2305_v52  ;;  %2437 = vst.msk [vmem:[%s3698_s6 + $0x3d8] sm:$0xff] %vm2313_vm3, %v2180_v53  ;;  %v2306_v57 = vmax.f32 %v2030_v54, 0.0 }
 0x1e4   : > { %2565 = vst.msk [vmem:[%s3698_s6 + $0x7d8] sm:$0xff] %vm2313_vm3, %v2308_v55  ;;  %2435 = vst.msk [vmem:[%s3698_s6 + $0x3c8] sm:$0xff] %vm2313_vm3, %v2178_v56  ;;  %v3070_v58 = vpop.f32.mrb[124].mxu0 }
 0x1e5   : > { %2563 = vst.msk [vmem:[%s3698_s6 + $0x7c8] sm:$0xff] %vm2313_vm3, %v2306_v57  ;;  %v1539_v59 = vadd.f32 %v4458_v30, %v3070_v58  ;;  %v3198_v60 = vpop.f32.mrb[124].mxu1  ;;  %v1530_v61 = vpop.f32.mrb[125].mxu0 }
 0x1e6   : > { %v2051_v62 = vadd.f32 %v4458_v30, %v3198_v60  ;;  %v1531_v63 = vadd.f32 %v4458_v30, %v1530_v61  ;;  %v2042_v0 = vpop.f32.mrb[125].mxu1  ;;  %v3071_v1 = vpop.f32.mrb[126].mxu0 }
 0x1e7   : > { %v2183_v2 = vmax.f32 %v1539_v59, 0.0  ;;  %v2043_v3 = vadd.f32 %v4458_v30, %v2042_v0  ;;  %v1542_v4 = vadd.f32 %v4458_v30, %v3071_v1  ;;  %v3199_v5 = vpop.f32.mrb[126].mxu1  ;;  %v1533_v6 = vpop.f32.mrb[127].mxu0 }
 0x1e8   : > { %v2311_v7 = vmax.f32 %v2051_v62, 0.0  ;;  %v2181_v8 = vmax.f32 %v1531_v63, 0.0  ;;  %v2054_v9 = vadd.f32 %v4458_v30, %v3199_v5  ;;  %v1534_v10 = vadd.f32 %v4458_v30, %v1533_v6  ;;  %v2045_v11 = vpop.f32.mrb[127].mxu1 }
 0x1e9   : > { %2440 = vst.msk [vmem:[%s3698_s6 + $0x3f0] sm:$0xff] %vm2313_vm3, %v2183_v2  ;;  %v2309_v12 = vmax.f32 %v2043_v3, 0.0  ;;  %v2184_v13 = vmax.f32 %v1542_v4, 0.0  ;;  %v2046_v14 = vadd.f32 %v4458_v30, %v2045_v11 }
 0x1ea   : > { %2568 = vst.msk [vmem:[%s3698_s6 + $0x7f0] sm:$0xff] %vm2313_vm3, %v2311_v7  ;;  %2438 = vst.msk [vmem:[%s3698_s6 + $0x3e0] sm:$0xff] %vm2313_vm3, %v2181_v8  ;;  %v2312_v16 = vmax.f32 %v2054_v9, 0.0  ;;  %v2182_v17 = vmax.f32 %v1534_v10, 0.0 }
 0x1eb   : > { %2566 = vst.msk [vmem:[%s3698_s6 + $0x7e0] sm:$0xff] %vm2313_vm3, %v2309_v12  ;;  %2441 = vst.msk [vmem:[%s3698_s6 + $0x3f8] sm:$0xff] %vm2313_vm3, %v2184_v13  ;;  %v2310_v18 = vmax.f32 %v2046_v14, 0.0 }
 0x1ec   : > { %2569 = vst.msk [vmem:[%s3698_s6 + $0x7f8] sm:$0xff] %vm2313_vm3, %v2312_v16  ;;  %2439 = vst.msk [vmem:[%s3698_s6 + $0x3e8] sm:$0xff] %vm2313_vm3, %v2182_v17 }
 0x1ed   : > { %2567 = vst.msk [vmem:[%s3698_s6 + $0x7e8] sm:$0xff] %vm2313_vm3, %v2310_v18 }
 0x1ee PF: > { %s13_s16 = sadd.s32 1, %s3283_s16   ;;  %s4542_s12 = smov %s3275_s14 }
 0x1ef   : > { %p10_p7 = scmp.ge.s32.totalorder %s13_s16, 6   ;;  %s4543_s13 = smov %s3279_s15 }
 0x1f0   : > { %s4544_s14 = smov %s4547_s17  ;;  %s4545_s15 = smov %s4551_s18 }
 0x1f1   :  { %12 = sbr.rel (!%p10_p7) target bundleno = 3 (0x3), region = 62 }

</bundles_post_ra>
